<compile_context>
chip_gen: v6e
topology: v6e:2x2x1
jax: 0.10.0
libtpu: 0.0.40
codegen_flags: <defaults>
</compile_context>

<pallas_src>
import functools
import math

import jax
import jax.numpy as jnp
from jax.experimental import pallas as pl
from jax.experimental.pallas import tpu as pltpu


# ----------------------------------------------------------------------------
# Fused kernel: one grid step == one GC_Block (stage) for one batch chunk.
# Activation lives in a VMEM scratch across stages.
# ----------------------------------------------------------------------------
def gcn_fused_kernel(cb, f,
                     x_hbm, w1_ref, att1_ref, s1_ref, t1_ref,
                     w2_ref, att2_ref, s2_ref, t2_ref,
                     out_ref, act_ref, copy_sem):
    chunk = pl.program_id(0)
    stage = pl.program_id(1)
    last_stage = pl.num_programs(1) - 1

    # Stage 0: pull this chunk's activations from HBM straight into the
    # resident VMEM scratch (x is never double-buffered across stages).
    @pl.when(stage == 0)
    def _():
        cp = pltpu.make_async_copy(x_hbm.at[chunk], act_ref, copy_sem.at[0])
        cp.start()
        cp.wait()

    y = act_ref[...]                                       # (n, cb*f), float32

    def gc_layer(y_f32, w_ref, att_ref, s_ref, t_ref):
        yb = y_f32.astype(jnp.bfloat16)
        w = w_ref[0]                                       # (f, f), bf16
        # support = x @ W, contracting only the true feature axis: one small
        # bf16 MXU dot per batch lane-slice (no block-diagonal zero FLOPs).
        sup = jnp.concatenate(
            [jnp.dot(yb[:, j * f:(j + 1) * f], w,
                     preferred_element_type=jnp.float32)
             for j in range(cb)], axis=-1)                 # (n, cb*f), f32
        # output = att @ support : single lane-dense bf16 MXU matmul.
        z = jnp.dot(att_ref[0], sup.astype(jnp.bfloat16),
                    preferred_element_type=jnp.float32)    # (n, cb*f), f32
        # Eval-mode BN + bias folded into scale/shift; broadcast (n,f)->(n,cb*f)
        # in-kernel (cheap VPU/XLU work that hides under the MXU).
        scale = jnp.concatenate([s_ref[0]] * cb, axis=-1)
        shift = jnp.concatenate([t_ref[0]] * cb, axis=-1)
        return jnp.tanh(z * scale + shift)                 # f32 epilogue

    z = gc_layer(y, w1_ref, att1_ref, s1_ref, t1_ref)
    z = gc_layer(z, w2_ref, att2_ref, s2_ref, t2_ref)
    y = z + y                                              # residual, f32

    @pl.when(stage < last_stage)
    def _():
        act_ref[...] = y                                   # keep resident

    @pl.when(stage == last_stage)
    def _():
        out_ref[0] = y.astype(out_ref.dtype)


# ----------------------------------------------------------------------------
# Wrapper: lane-dense (node_n, chunk_batch*feat) layout, batch chunking,
# stacked per-stage weights.
# ----------------------------------------------------------------------------
def gcn_forward(x, packed_params):
    """x: (batch, node_n, feat). packed_params: output of pack_gcn_params."""
    b, n, f = x.shape
    num_stage = packed_params[0].shape[0]

    # Smallest per-chunk batch cb so the lane width cb*f is a multiple of 128.
    # Remaining batch goes to the parallel chunk grid axis (v7x: 2 TCs).
    cb = 128 // math.gcd(f, 128)
    b_pad = ((b + cb - 1) // cb) * cb
    num_chunks = b_pad // cb
    cbf = cb * f

    xp = x if b_pad == b else jnp.concatenate(
        [x, jnp.zeros((b_pad - b, n, f), x.dtype)], axis=0)
    # (b_pad, n, f) -> (chunks, n, cb*f): lane dim = (chunk-local batch)*feat.
    x_lane = xp.reshape(num_chunks, cb, n, f).transpose(0, 2, 1, 3)
    x_lane = x_lane.reshape(num_chunks, n, cbf)

    def stage_spec(d1, d2):
        # Stacked per-stage parameter: pick the slice for the current stage.
        return pl.BlockSpec((1, d1, d2), lambda c, s: (s, 0, 0))

    in_specs = [
        pl.BlockSpec(memory_space=pl.ANY),    # x stays in HBM; DMA'd at stage 0
        stage_spec(f, f), stage_spec(n, n),   # W1 (bf16), att1 (bf16)
        stage_spec(n, f), stage_spec(n, f),   # bn1 scale, bn1 shift(+bias)
        stage_spec(f, f), stage_spec(n, n),   # W2 (bf16), att2 (bf16)
        stage_spec(n, f), stage_spec(n, f),   # bn2 scale, bn2 shift(+bias)
    ]

    out = pl.pallas_call(
        functools.partial(gcn_fused_kernel, cb, f),
        out_shape=jax.ShapeDtypeStruct((num_chunks, n, cbf), x.dtype),
        grid=(num_chunks, num_stage),
        in_specs=in_specs,
        out_specs=pl.BlockSpec((1, n, cbf), lambda c, s: (c, 0, 0)),
        scratch_shapes=[
            pltpu.VMEM((n, cbf), jnp.float32),    # resident activation
            pltpu.SemaphoreType.DMA((1,)),        # x -> act copy sem
        ],
        compiler_params=pltpu.CompilerParams(
            dimension_semantics=("parallel", "arbitrary"),
            vmem_limit_bytes=32 * 1024 * 1024),
    )(x_lane, *packed_params)

    # (chunks, n, cb*f) -> (b_pad, n, f) -> trim batch padding.
    out = out.reshape(num_chunks, n, cb, f).transpose(0, 2, 1, 3)
    out = out.reshape(b_pad, n, f)
    return out[:b]


# ----------------------------------------------------------------------------
# Parameter construction / packing.
# ----------------------------------------------------------------------------
def init_gc_block_params(key, hidden_feature, node_n, dtype=jnp.float32):
    """Deterministic parameter init mirroring GC_Block.__init__ shapes."""
    f, n = hidden_feature, node_n
    stdv = 1.0 / math.sqrt(f)
    ks = jax.random.split(key, 6)

    def uni(k, shape):
        return jax.random.uniform(k, shape, dtype, minval=-stdv, maxval=stdv)

    w1, att1, b1 = uni(ks[0], (f, f)), uni(ks[1], (n, n)), uni(ks[2], (f,))
    w2, att2, b2 = uni(ks[3], (f, f)), uni(ks[4], (n, n)), uni(ks[5], (f,))

    # BatchNorm1d(node_n * f), eval mode: gamma=1, beta=0, mean=0, var=1.
    eps = 1e-5

    def bn_fold():
        gamma = jnp.ones((n * f,), dtype)
        beta = jnp.zeros((n * f,), dtype)
        r_mean = jnp.zeros((n * f,), dtype)
        r_var = jnp.ones((n * f,), dtype)
        inv = gamma / jnp.sqrt(r_var + eps)
        return inv.reshape(n, f), (beta - r_mean * inv).reshape(n, f)

    s1, t1 = bn_fold()
    s2, t2 = bn_fold()
    return (w1, att1, b1, s1, t1, w2, att2, b2, s2, t2)


def pack_gcn_params(all_block_params):
    """Stack per-stage params for the fused kernel.

    * W / att -> bf16 (MXU-native inputs; accumulation stays f32 in-kernel).
    * scale/shift stay (n, f) f32; bias folded: (y+b)*s + t == y*s + (b*s+t).
    """
    def pack_one(p):
        w1, att1, b1, s1, t1, w2, att2, b2, s2, t2 = p
        t1f = b1[None, :] * s1 + t1
        t2f = b2[None, :] * s2 + t2
        return (w1.astype(jnp.bfloat16), att1.astype(jnp.bfloat16), s1, t1f,
                w2.astype(jnp.bfloat16), att2.astype(jnp.bfloat16), s2, t2f)

    per_stage = [pack_one(p) for p in all_block_params]
    return tuple(jnp.stack([ps[i] for ps in per_stage]) for i in range(8))


# ----------------------------------------------------------------------------
# Pure-JAX reference (eval-mode GC_Block stack).
# ----------------------------------------------------------------------------
def ref_block(x, p, matmul_dtype):
    w1, att1, b1, s1, t1, w2, att2, b2, s2, t2 = p

    def gc(y, w, att, bias):
        sup = jnp.einsum('bnf,fg->bng', y.astype(matmul_dtype),
                         w.astype(matmul_dtype),
                         preferred_element_type=jnp.float32)
        out = jnp.einsum('nm,bmf->bnf', att.astype(matmul_dtype),
                         sup.astype(matmul_dtype),
                         preferred_element_type=jnp.float32)
        return out + bias

    y = jnp.tanh(gc(x, w1, att1, b1) * s1 + t1)
    y = jnp.tanh(gc(y, w2, att2, b2) * s2 + t2)
    return y + x


# ----------------------------------------------------------------------------
if __name__ == "__main__":
    # Small shapes consistent with the module: (batch, node_n, hidden_feature).
    batch, node_n, hidden_feature = 6, 48, 32
    num_stage = 2

    key = jax.random.PRNGKey(0)
    k_x, k_p = jax.random.split(key)
    x = jax.random.normal(k_x, (batch, node_n, hidden_feature), jnp.float32)

    block_keys = jax.random.split(k_p, num_stage)
    all_params = [init_gc_block_params(block_keys[i], hidden_feature, node_n)
                  for i in range(num_stage)]

    packed = pack_gcn_params(all_params)
    out = gcn_forward(x, packed)
    out = jax.block_until_ready(out)
    assert out.shape == x.shape

    # Matched-precision reference (bf16 matmul inputs, f32 accumulation) and a
    # looser full-f32 sanity check against the original module semantics.
    ref_bf16 = x
    ref_f32 = x
    for p in all_params:
        ref_bf16 = ref_block(ref_bf16, p, jnp.bfloat16)
        ref_f32 = ref_block(ref_f32, p, jnp.float32)

    assert jnp.allclose(out, ref_bf16, atol=2e-3, rtol=2e-3), \
        "mismatch vs matched-precision reference"
    max_err_f32 = float(jnp.max(jnp.abs(out - ref_f32)))
    assert max_err_f32 < 0.15, f"bf16 quantization error too large: {max_err_f32}"

    print("KERNEL_OK")
</pallas_src>

<mosaic_0001>
module attributes {stable_mosaic.version = 11 : i64} {
  func.func @gcn_fused_kernel(%arg0: i32, %arg1: i32, %arg2: memref<2x48x128xf32, #tpu.memory_space<any>>, %arg3: memref<1x32x32xbf16, #tpu.memory_space<vmem>>, %arg4: memref<1x48x48xbf16, #tpu.memory_space<vmem>>, %arg5: memref<1x48x32xf32, #tpu.memory_space<vmem>>, %arg6: memref<1x48x32xf32, #tpu.memory_space<vmem>>, %arg7: memref<1x32x32xbf16, #tpu.memory_space<vmem>>, %arg8: memref<1x48x48xbf16, #tpu.memory_space<vmem>>, %arg9: memref<1x48x32xf32, #tpu.memory_space<vmem>>, %arg10: memref<1x48x32xf32, #tpu.memory_space<vmem>>, %arg11: memref<1x48x128xf32, #tpu.memory_space<vmem>>, %arg12: memref<48x128xf32, #tpu.memory_space<vmem>>, %arg13: memref<1x!tpu.dma_semaphore, #tpu.memory_space<semaphore_mem>>) attributes {dimension_semantics = [#tpu.dimension_semantics<parallel>, #tpu.dimension_semantics<arbitrary>], iteration_bounds = array<i64: 2, 2>, scalar_prefetch = 0 : i64, scratch_operands = 2 : i64, tpu.core_type = #tpu.core_type<tc>, window_params = [{}, {transform_indices = @transform_1, window_bounds = array<i64: 1, 32, 32>}, {transform_indices = @transform_2, window_bounds = array<i64: 1, 48, 48>}, {transform_indices = @transform_3, window_bounds = array<i64: 1, 48, 32>}, {transform_indices = @transform_4, window_bounds = array<i64: 1, 48, 32>}, {transform_indices = @transform_5, window_bounds = array<i64: 1, 32, 32>}, {transform_indices = @transform_6, window_bounds = array<i64: 1, 48, 48>}, {transform_indices = @transform_7, window_bounds = array<i64: 1, 48, 32>}, {transform_indices = @transform_8, window_bounds = array<i64: 1, 48, 32>}, {transform_indices = @transform_9, window_bounds = array<i64: 1, 48, 128>}]} {
    %c0_i32 = arith.constant 0 : i32
    %0 = arith.cmpi eq, %arg1, %c0_i32 : i32
    %1 = arith.extui %0 : i1 to i32
    %c0_i32_0 = arith.constant 0 : i32
    %2 = arith.cmpi ne, %1, %c0_i32_0 : i32
    scf.if %2 {
      %c0_i32_38 = arith.constant 0 : i32
      %c0_i32_39 = arith.constant 0 : i32
      %c0_i32_40 = arith.constant 0 : i32
      %61 = tpu.memref_slice %arg2[%arg0, %c0_i32_39, %c0_i32_40] : memref<2x48x128xf32, #tpu.memory_space<any>> -> memref<1x48x128xf32, #tpu.memory_space<any>>
      %62 = tpu.memref_squeeze %61 : memref<1x48x128xf32, #tpu.memory_space<any>> -> memref<48x128xf32, #tpu.memory_space<any>>
      %63 = tpu.memref_slice %arg13[%c0_i32_38] : memref<1x!tpu.dma_semaphore, #tpu.memory_space<semaphore_mem>> -> memref<1x!tpu.dma_semaphore, #tpu.memory_space<semaphore_mem>>
      %64 = tpu.memref_squeeze %63 : memref<1x!tpu.dma_semaphore, #tpu.memory_space<semaphore_mem>> -> memref<!tpu.dma_semaphore, #tpu.memory_space<semaphore_mem>>
      tpu.enqueue_dma source(%62 : memref<48x128xf32, #tpu.memory_space<any>>) target(%arg12 : memref<48x128xf32, #tpu.memory_space<vmem>>) target_semaphore(%64 : memref<!tpu.dma_semaphore, #tpu.memory_space<semaphore_mem>>)
      %c0_i32_41 = arith.constant 0 : i32
      %c0_i32_42 = arith.constant 0 : i32
      %c0_i32_43 = arith.constant 0 : i32
      %65 = tpu.memref_slice %arg2[%arg0, %c0_i32_42, %c0_i32_43] : memref<2x48x128xf32, #tpu.memory_space<any>> -> memref<1x48x128xf32, #tpu.memory_space<any>>
      %66 = tpu.memref_squeeze %65 : memref<1x48x128xf32, #tpu.memory_space<any>> -> memref<48x128xf32, #tpu.memory_space<any>>
      %67 = tpu.memref_slice %arg13[%c0_i32_41] : memref<1x!tpu.dma_semaphore, #tpu.memory_space<semaphore_mem>> -> memref<1x!tpu.dma_semaphore, #tpu.memory_space<semaphore_mem>>
      %68 = tpu.memref_squeeze %67 : memref<1x!tpu.dma_semaphore, #tpu.memory_space<semaphore_mem>> -> memref<!tpu.dma_semaphore, #tpu.memory_space<semaphore_mem>>
      tpu.wait_dma2 semaphore(%68 : memref<!tpu.dma_semaphore, #tpu.memory_space<semaphore_mem>>) src(%66 : memref<48x128xf32, #tpu.memory_space<any>>) dst(%arg12 : memref<48x128xf32, #tpu.memory_space<vmem>>)
    } else {
    }
    %c0 = arith.constant 0 : index
    %c0_1 = arith.constant 0 : index
    %3 = vector.load %arg12[%c0, %c0_1] : memref<48x128xf32, #tpu.memory_space<vmem>>, vector<48x128xf32>
    %4 = arith.truncf %3 : vector<48x128xf32> to vector<48x128xbf16>
    %c0_2 = arith.constant 0 : index
    %c0_3 = arith.constant 0 : index
    %c0_4 = arith.constant 0 : index
    %5 = vector.load %arg3[%c0_2, %c0_3, %c0_4] : memref<1x32x32xbf16, #tpu.memory_space<vmem>>, vector<1x32x32xbf16>
    %6 = vector.shape_cast %5 : vector<1x32x32xbf16> to vector<32x32xbf16>
    %7 = vector.extract_strided_slice %4 {offsets = [0, 0], sizes = [48, 32], strides = [1, 1]} : vector<48x128xbf16> to vector<48x32xbf16>
    %cst = arith.constant dense<0.000000e+00> : vector<48x32xf32>
    %8 = tpu.matmul %7, %6, %cst {dimension_numbers = #tpu.dot_dimension_numbers<[1], [0], [0], [1], [0, 0, 1, 1], [], []>} : vector<48x32xbf16>, vector<32x32xbf16>, vector<48x32xf32> -> vector<48x32xf32>
    %9 = vector.extract_strided_slice %4 {offsets = [0, 32], sizes = [48, 32], strides = [1, 1]} : vector<48x128xbf16> to vector<48x32xbf16>
    %cst_5 = arith.constant dense<0.000000e+00> : vector<48x32xf32>
    %10 = tpu.matmul %9, %6, %cst_5 {dimension_numbers = #tpu.dot_dimension_numbers<[1], [0], [0], [1], [0, 0, 1, 1], [], []>} : vector<48x32xbf16>, vector<32x32xbf16>, vector<48x32xf32> -> vector<48x32xf32>
    %11 = vector.extract_strided_slice %4 {offsets = [0, 64], sizes = [48, 32], strides = [1, 1]} : vector<48x128xbf16> to vector<48x32xbf16>
    %cst_6 = arith.constant dense<0.000000e+00> : vector<48x32xf32>
    %12 = tpu.matmul %11, %6, %cst_6 {dimension_numbers = #tpu.dot_dimension_numbers<[1], [0], [0], [1], [0, 0, 1, 1], [], []>} : vector<48x32xbf16>, vector<32x32xbf16>, vector<48x32xf32> -> vector<48x32xf32>
    %13 = vector.extract_strided_slice %4 {offsets = [0, 96], sizes = [48, 32], strides = [1, 1]} : vector<48x128xbf16> to vector<48x32xbf16>
    %cst_7 = arith.constant dense<0.000000e+00> : vector<48x32xf32>
    %14 = tpu.matmul %13, %6, %cst_7 {dimension_numbers = #tpu.dot_dimension_numbers<[1], [0], [0], [1], [0, 0, 1, 1], [], []>} : vector<48x32xbf16>, vector<32x32xbf16>, vector<48x32xf32> -> vector<48x32xf32>
    %15 = tpu.concatenate %8, %10, %12, %14 in 1 : vector<48x32xf32>, vector<48x32xf32>, vector<48x32xf32>, vector<48x32xf32> -> vector<48x128xf32>
    %c0_8 = arith.constant 0 : index
    %c0_9 = arith.constant 0 : index
    %c0_10 = arith.constant 0 : index
    %16 = vector.load %arg4[%c0_8, %c0_9, %c0_10] : memref<1x48x48xbf16, #tpu.memory_space<vmem>>, vector<1x48x48xbf16>
    %17 = vector.shape_cast %16 : vector<1x48x48xbf16> to vector<48x48xbf16>
    %18 = arith.truncf %15 : vector<48x128xf32> to vector<48x128xbf16>
    %cst_11 = arith.constant dense<0.000000e+00> : vector<48x128xf32>
    %19 = tpu.matmul %17, %18, %cst_11 {dimension_numbers = #tpu.dot_dimension_numbers<[1], [0], [0], [1], [0, 0, 1, 1], [], []>} : vector<48x48xbf16>, vector<48x128xbf16>, vector<48x128xf32> -> vector<48x128xf32>
    %c0_12 = arith.constant 0 : index
    %c0_13 = arith.constant 0 : index
    %c0_14 = arith.constant 0 : index
    %20 = vector.load %arg5[%c0_12, %c0_13, %c0_14] : memref<1x48x32xf32, #tpu.memory_space<vmem>>, vector<1x48x32xf32>
    %21 = vector.shape_cast %20 : vector<1x48x32xf32> to vector<48x32xf32>
    %22 = tpu.concatenate %21, %21, %21, %21 in 1 : vector<48x32xf32>, vector<48x32xf32>, vector<48x32xf32>, vector<48x32xf32> -> vector<48x128xf32>
    %c0_15 = arith.constant 0 : index
    %c0_16 = arith.constant 0 : index
    %c0_17 = arith.constant 0 : index
    %23 = vector.load %arg6[%c0_15, %c0_16, %c0_17] : memref<1x48x32xf32, #tpu.memory_space<vmem>>, vector<1x48x32xf32>
    %24 = vector.shape_cast %23 : vector<1x48x32xf32> to vector<48x32xf32>
    %25 = tpu.concatenate %24, %24, %24, %24 in 1 : vector<48x32xf32>, vector<48x32xf32>, vector<48x32xf32>, vector<48x32xf32> -> vector<48x128xf32>
    %26 = arith.mulf %19, %22 : vector<48x128xf32>
    %27 = arith.addf %26, %25 : vector<48x128xf32>
    %28 = math.tanh %27 : vector<48x128xf32>
    %29 = arith.truncf %28 : vector<48x128xf32> to vector<48x128xbf16>
    %c0_18 = arith.constant 0 : index
    %c0_19 = arith.constant 0 : index
    %c0_20 = arith.constant 0 : index
    %30 = vector.load %arg7[%c0_18, %c0_19, %c0_20] : memref<1x32x32xbf16, #tpu.memory_space<vmem>>, vector<1x32x32xbf16>
    %31 = vector.shape_cast %30 : vector<1x32x32xbf16> to vector<32x32xbf16>
    %32 = vector.extract_strided_slice %29 {offsets = [0, 0], sizes = [48, 32], strides = [1, 1]} : vector<48x128xbf16> to vector<48x32xbf16>
    %cst_21 = arith.constant dense<0.000000e+00> : vector<48x32xf32>
    %33 = tpu.matmul %32, %31, %cst_21 {dimension_numbers = #tpu.dot_dimension_numbers<[1], [0], [0], [1], [0, 0, 1, 1], [], []>} : vector<48x32xbf16>, vector<32x32xbf16>, vector<48x32xf32> -> vector<48x32xf32>
    %34 = vector.extract_strided_slice %29 {offsets = [0, 32], sizes = [48, 32], strides = [1, 1]} : vector<48x128xbf16> to vector<48x32xbf16>
    %cst_22 = arith.constant dense<0.000000e+00> : vector<48x32xf32>
    %35 = tpu.matmul %34, %31, %cst_22 {dimension_numbers = #tpu.dot_dimension_numbers<[1], [0], [0], [1], [0, 0, 1, 1], [], []>} : vector<48x32xbf16>, vector<32x32xbf16>, vector<48x32xf32> -> vector<48x32xf32>
    %36 = vector.extract_strided_slice %29 {offsets = [0, 64], sizes = [48, 32], strides = [1, 1]} : vector<48x128xbf16> to vector<48x32xbf16>
    %cst_23 = arith.constant dense<0.000000e+00> : vector<48x32xf32>
    %37 = tpu.matmul %36, %31, %cst_23 {dimension_numbers = #tpu.dot_dimension_numbers<[1], [0], [0], [1], [0, 0, 1, 1], [], []>} : vector<48x32xbf16>, vector<32x32xbf16>, vector<48x32xf32> -> vector<48x32xf32>
    %38 = vector.extract_strided_slice %29 {offsets = [0, 96], sizes = [48, 32], strides = [1, 1]} : vector<48x128xbf16> to vector<48x32xbf16>
    %cst_24 = arith.constant dense<0.000000e+00> : vector<48x32xf32>
    %39 = tpu.matmul %38, %31, %cst_24 {dimension_numbers = #tpu.dot_dimension_numbers<[1], [0], [0], [1], [0, 0, 1, 1], [], []>} : vector<48x32xbf16>, vector<32x32xbf16>, vector<48x32xf32> -> vector<48x32xf32>
    %40 = tpu.concatenate %33, %35, %37, %39 in 1 : vector<48x32xf32>, vector<48x32xf32>, vector<48x32xf32>, vector<48x32xf32> -> vector<48x128xf32>
    %c0_25 = arith.constant 0 : index
    %c0_26 = arith.constant 0 : index
    %c0_27 = arith.constant 0 : index
    %41 = vector.load %arg8[%c0_25, %c0_26, %c0_27] : memref<1x48x48xbf16, #tpu.memory_space<vmem>>, vector<1x48x48xbf16>
    %42 = vector.shape_cast %41 : vector<1x48x48xbf16> to vector<48x48xbf16>
    %43 = arith.truncf %40 : vector<48x128xf32> to vector<48x128xbf16>
    %cst_28 = arith.constant dense<0.000000e+00> : vector<48x128xf32>
    %44 = tpu.matmul %42, %43, %cst_28 {dimension_numbers = #tpu.dot_dimension_numbers<[1], [0], [0], [1], [0, 0, 1, 1], [], []>} : vector<48x48xbf16>, vector<48x128xbf16>, vector<48x128xf32> -> vector<48x128xf32>
    %c0_29 = arith.constant 0 : index
    %c0_30 = arith.constant 0 : index
    %c0_31 = arith.constant 0 : index
    %45 = vector.load %arg9[%c0_29, %c0_30, %c0_31] : memref<1x48x32xf32, #tpu.memory_space<vmem>>, vector<1x48x32xf32>
    %46 = vector.shape_cast %45 : vector<1x48x32xf32> to vector<48x32xf32>
    %47 = tpu.concatenate %46, %46, %46, %46 in 1 : vector<48x32xf32>, vector<48x32xf32>, vector<48x32xf32>, vector<48x32xf32> -> vector<48x128xf32>
    %c0_32 = arith.constant 0 : index
    %c0_33 = arith.constant 0 : index
    %c0_34 = arith.constant 0 : index
    %48 = vector.load %arg10[%c0_32, %c0_33, %c0_34] : memref<1x48x32xf32, #tpu.memory_space<vmem>>, vector<1x48x32xf32>
    %49 = vector.shape_cast %48 : vector<1x48x32xf32> to vector<48x32xf32>
    %50 = tpu.concatenate %49, %49, %49, %49 in 1 : vector<48x32xf32>, vector<48x32xf32>, vector<48x32xf32>, vector<48x32xf32> -> vector<48x128xf32>
    %51 = arith.mulf %44, %47 : vector<48x128xf32>
    %52 = arith.addf %51, %50 : vector<48x128xf32>
    %53 = math.tanh %52 : vector<48x128xf32>
    %54 = arith.addf %53, %3 : vector<48x128xf32>
    %c1_i32 = arith.constant 1 : i32
    %55 = arith.cmpi slt, %arg1, %c1_i32 : i32
    %56 = arith.extui %55 : i1 to i32
    %c0_i32_35 = arith.constant 0 : i32
    %57 = arith.cmpi ne, %56, %c0_i32_35 : i32
    scf.if %57 {
      %c0_38 = arith.constant 0 : index
      %c0_39 = arith.constant 0 : index
      %61 = vector.load %arg12[%c0_38, %c0_39] : memref<48x128xf32, #tpu.memory_space<vmem>>, vector<48x128xf32>
      tpu.vector_store %arg12[%c0_38, %c0_39], %54 {strides = array<i32>} : memref<48x128xf32, #tpu.memory_space<vmem>>, vector<48x128xf32>,
    } else {
    }
    %c1_i32_36 = arith.constant 1 : i32
    %58 = arith.cmpi eq, %arg1, %c1_i32_36 : i32
    %59 = arith.extui %58 : i1 to i32
    %c0_i32_37 = arith.constant 0 : i32
    %60 = arith.cmpi ne, %59, %c0_i32_37 : i32
    scf.if %60 {
      %c0_38 = arith.constant 0 : index
      %c0_39 = arith.constant 0 : index
      %c0_40 = arith.constant 0 : index
      %61 = vector.load %arg11[%c0_38, %c0_39, %c0_40] : memref<1x48x128xf32, #tpu.memory_space<vmem>>, vector<1x48x128xf32>
      %62 = vector.shape_cast %61 : vector<1x48x128xf32> to vector<48x128xf32>
      %63 = vector.shape_cast %54 : vector<48x128xf32> to vector<1x48x128xf32>
      tpu.vector_store %arg11[%c0_38, %c0_39, %c0_40], %63 {strides = array<i32>} : memref<1x48x128xf32, #tpu.memory_space<vmem>>, vector<1x48x128xf32>,
    } else {
    }
    return
  }
  func.func @transform_1(%arg0: i32, %arg1: i32) -> (i32, i32, i32) {
    %c0_i32 = arith.constant 0 : i32
    %c0_i32_0 = arith.constant 0 : i32
    %c0_i32_1 = arith.constant 0 : i32
    return %arg1, %c0_i32, %c0_i32_0 : i32, i32, i32
  }
  func.func @transform_2(%arg0: i32, %arg1: i32) -> (i32, i32, i32) {
    %c0_i32 = arith.constant 0 : i32
    %c0_i32_0 = arith.constant 0 : i32
    %c0_i32_1 = arith.constant 0 : i32
    return %arg1, %c0_i32, %c0_i32_0 : i32, i32, i32
  }
  func.func @transform_3(%arg0: i32, %arg1: i32) -> (i32, i32, i32) {
    %c0_i32 = arith.constant 0 : i32
    %c0_i32_0 = arith.constant 0 : i32
    %c0_i32_1 = arith.constant 0 : i32
    return %arg1, %c0_i32, %c0_i32_0 : i32, i32, i32
  }
  func.func @transform_4(%arg0: i32, %arg1: i32) -> (i32, i32, i32) {
    %c0_i32 = arith.constant 0 : i32
    %c0_i32_0 = arith.constant 0 : i32
    %c0_i32_1 = arith.constant 0 : i32
    return %arg1, %c0_i32, %c0_i32_0 : i32, i32, i32
  }
  func.func @transform_5(%arg0: i32, %arg1: i32) -> (i32, i32, i32) {
    %c0_i32 = arith.constant 0 : i32
    %c0_i32_0 = arith.constant 0 : i32
    %c0_i32_1 = arith.constant 0 : i32
    return %arg1, %c0_i32, %c0_i32_0 : i32, i32, i32
  }
  func.func @transform_6(%arg0: i32, %arg1: i32) -> (i32, i32, i32) {
    %c0_i32 = arith.constant 0 : i32
    %c0_i32_0 = arith.constant 0 : i32
    %c0_i32_1 = arith.constant 0 : i32
    return %arg1, %c0_i32, %c0_i32_0 : i32, i32, i32
  }
  func.func @transform_7(%arg0: i32, %arg1: i32) -> (i32, i32, i32) {
    %c0_i32 = arith.constant 0 : i32
    %c0_i32_0 = arith.constant 0 : i32
    %c0_i32_1 = arith.constant 0 : i32
    return %arg1, %c0_i32, %c0_i32_0 : i32, i32, i32
  }
  func.func @transform_8(%arg0: i32, %arg1: i32) -> (i32, i32, i32) {
    %c0_i32 = arith.constant 0 : i32
    %c0_i32_0 = arith.constant 0 : i32
    %c0_i32_1 = arith.constant 0 : i32
    return %arg1, %c0_i32, %c0_i32_0 : i32, i32, i32
  }
  func.func @transform_9(%arg0: i32, %arg1: i32) -> (i32, i32, i32) {
    %c0_i32 = arith.constant 0 : i32
    %c0_i32_0 = arith.constant 0 : i32
    %c0_i32_1 = arith.constant 0 : i32
    return %arg0, %c0_i32, %c0_i32_0 : i32, i32, i32
  }
}

</mosaic_0001>

<bundles_post_ra>
// kernel: tpu_custom_call.1
= control target key start
LH: loop header
LB: loop body
LE: loop exit
PB: predicated region body
PF: predicated region fallthrough
CT: control target
= control target key end

     0   :  { %s3489_s0 = inlined_call_operand.vmem [shape: f32[2,48,128], index: 0, kind: input, shape index: {}]   ;;  %s3490_s1 = inlined_call_operand.vmem [shape: bf16[2,32,32], index: 1, kind: input, shape index: {}]   ;;  %s3491_s2 = inlined_call_operand.vmem [shape: bf16[2,48,48], index: 2, kind: input, shape index: {}]   ;;  %s3492_s3 = inlined_call_operand.vmem [shape: f32[2,48,32], index: 3, kind: input, shape index: {}]   ;;  %s3493_s4 = inlined_call_operand.vmem [shape: f32[2,48,32], index: 4, kind: input, shape index: {}]   ;;  %s3494_s5 = inlined_call_operand.vmem [shape: bf16[2,32,32], index: 5, kind: input, shape index: {}]   ;;  %s3495_s6 = inlined_call_operand.vmem [shape: bf16[2,48,48], index: 6, kind: input, shape index: {}]   ;;  %s3496_s7 = inlined_call_operand.vmem [shape: f32[2,48,32], index: 7, kind: input, shape index: {}]   ;;  %s3497_s8 = inlined_call_operand.vmem [shape: f32[2,48,32], index: 8, kind: input, shape index: {}]   ;;  %s3498_s9 = inlined_call_operand.hbm [shape: f32[2,48,128], index: 9, kind: output, shape index: {}]  }
   0x1   :  { %3509 = sst [smem:[#allocation18_spill]] %s3490_s1 }
   0x2   :  { %3510 = sst [smem:[#allocation19_spill]] %s3491_s2 }
   0x3   :  { %3511 = sst [smem:[#allocation20_spill]] %s3498_s9 }
   0x4   :  { %14 = vsyncpa [#allocation5], 0 }
   0x5   :  { %16 = vsyncpa [#allocation5 + $0x1], 0  ;;  %s2729_s30 = smov 0   ;;  %s2731_s10 = smov 0  }
   0x6   :  { %s2733_s11 = smov 0   ;;  %s2735_s12 = smov 0  }
   0x7   :  { %s2737_s13 = smov 0   ;;  %s2739_s14 = smov 0  }
   0x8   :  { %s2741_s15 = smov 0   ;;  %s2743_s16 = smov 0  }
   0x9 LB: > { %3512 = sst [smem:[#allocation9_spill]] %s2641_s30  ;;  %s2083_s17 = sadd.s32 4294967295, %s2669_s16   ;;  %s2669_s16 = sphi %s2743_s16, %s22_s16   ;;  %s2665_s15 = sphi %s2741_s15, %s3535_s15   ;;  %s2661_s14 = sphi %s2739_s14, %s3534_s14   ;;  %s2657_s13 = sphi %s2737_s13, %s3533_s13   ;;  %s2653_s12 = sphi %s2735_s12, %s3532_s12   ;;  %s2649_s11 = sphi %s2733_s11, %s3531_s11   ;;  %s2645_s10 = sphi %s2731_s10, %s3537_s10   ;;  %s2641_s30 = sphi %s2729_s30, %s3536_s30  }
   0xa   : > { %3513 = sst [smem:[#allocation10_spill]] %s2649_s11  ;;  %s2084_s18 = sadd.s32 4294967294, %s2669_s16  }
   0xb   : > { %3514 = sst [smem:[#allocation11_spill]] %s2661_s14  ;;  %s31_s19 = sadd.s32 1, %s2661_s14 }
   0xc   : > { %3515 = sst [smem:[#allocation12_spill]] %s2665_s15  ;;  %p32_p0 = scmp.ge.s32.totalorder %s31_s19, 2 }
   0xd   : > { %3516 = sst [smem:[#allocation13_spill]] %s2669_s16  ;;  %s34_s20 = sadd.s32 1, %s2665_s15 }
   0xe   : > { %p259_p1 = scmp.ne.s32.totalorder %s2649_s11, %s2645_s10  ;;  %p260_p2 = scmp.eq.s32.totalorder %s2083_s17, 3 }
   0xf   : > { %s3539_s19 = smov (%p32_p0, %s31_s19), 0  ;;  %s3541_s20 = smov (!%p32_p0, %s34_s20), %s2665_s15 }
  0x10   : > { %3517 = sst [smem:[#allocation14_spill]] %s3539_s19  ;;  %p2778_p3 = por %p260_p2, %p259_p1 }
  0x11   : > { %p265_p4 = scmp.ne.s32.totalorder %s2645_s10, %s2641_s30  ;;  %p36_p5 = scmp.ge.s32.totalorder %s3541_s20, 2 }
  0x12   : > { %p266_p6 = scmp.eq.s32.totalorder %s2084_s18, 3  ;;  %p2087_p7 = scmp.ge.s32.totalorder %s2669_s16, 1 }
  0x13   : > { %p348_p8 = scmp.lt.s32.totalorder %s2669_s16, 5  ;;  %s3543_s20 = smov (%p36_p5, %s3541_s20), 0 }
  0x14   : > { %3519 = sst [smem:[#allocation15_spill]] %s3543_s20  ;;  %p2788_p9 = por %p266_p6, %p265_p4 }
  0x15   : > { %p349_p10 = pnand %p2087_p7, %p348_p8  ;;  %s246_s23 = ssub.s32 %s2665_s15, %s3543_s20 }
  0x16   : > { %s3520_s22 = scalar_select %p2788_p9, 1, 0 }
  0x17   : > { %s249_s24 = sadd.s32 1, %s2649_s11  ;;  %p247_p11 = scmp.eq.s32.totalorder %s246_s23, 0 }
  0x18   : > { %3521 = sst [smem:[#allocation16_spill]] %s3520_s22  ;;  %352 = sbr.rel (%p349_p10) target bundleno = 1508 (0x5e4), region = 52 }
  0x19   : > { %s2796_s25 = scalar_select %p247_p11, %s2649_s11, %s249_s24  }
  0x1a   : > { %s3504_s26 = sand.u32 (!%p349_p10), 1, %s2645_s10   ;;  %p417_p12 = scmp.lt.s32.totalorder (!%p349_p10), %s2653_s12, 1 }
  0x1b   : > { %3522 = sst [smem:[#allocation17_spill]] %s2796_s25  ;;  %s2363_s27 = smul.u32 (!%p349_p10), 48, %s3504_s26 }
  0x1c   : > { %s3523_s1 = sld [smem:[#allocation18_spill]] (!%p349_p10)  ;;  %p2098_p13 = scmp.ne.s32.totalorder (!%p349_p10), %s2653_s12, 0 }
  0x1d   : > { %s418_s28 = scalar_select %p417_p12, %s2653_s12, 1 }
  0x1e   : > { %s3524_s2 = sld [smem:[#allocation19_spill]]  ;;  %s2843_s26 = scalar_lea.vmem [#allocation4], %s2363_s27 }
  0x1f   : > { %s2145_s29 = sshll.u32 %s418_s28, 4  ;;  %s2364_s17 = smul.u32 24, %s418_s28 }
  0x20   : > { %s2365_s23 = smul.u32 48, %s418_s28  ;;  %s2816_s22 = scalar_lea.vmem %s3494_s5, %s2145_s29 }
  0x21   : > { %s2831_s15 = scalar_lea.vmem %s3495_s6, %s2364_s17  ;;  %461 = sbr.rel (%p2098_p13) target bundleno = 47 (0x2f), region = 56 }
  0x22   : > { %s2806_s20 = scalar_lea.vmem %s3523_s1, %s2145_s29  ;;  %s2821_s16 = scalar_lea.vmem %s3492_s3, %s2365_s23 }
  0x23   : > { %s2826_s18 = scalar_lea.vmem %s3493_s4, %s2365_s23  ;;  %s2836_s11 = scalar_lea.vmem %s3496_s7, %s2365_s23 }
  0x24   : > { %s2811_s14 = scalar_lea.vmem %s3524_s2, %s2364_s17  ;;  %s2841_s30 = scalar_lea.vmem %s3497_s8, %s2365_s23 }
  0x25   : > { %s462_s9 = smul.u32 (!%p2098_p13), 48, %s2657_s13 }
  0x27   : > { %s463_s19 = scalar_lea.vmem %s3489_s0, %s462_s9 }
  0x28   : > { %v497_v0 = vld [vmem:[%s463_s19] sm:$0xff]  ;;  %v499_v1 = vld [vmem:[%s463_s19 + $0x8] sm:$0xff]  ;;  %v501_v2 = vld [vmem:[%s463_s19 + $0x10] sm:$0xff] }
  0x29   : > { %498 = vst [vmem:[#allocation2 + $0x28] sm:$0xff] %v497_v0  ;;  %500 = vst [vmem:[#allocation2 + $0x10] sm:$0xff] %v499_v1  ;;  %v503_v3 = vld [vmem:[%s463_s19 + $0x18] sm:$0xff]  ;;  %v505_v4 = vld [vmem:[%s463_s19 + $0x20] sm:$0xff] }
  0x2a   : > { %502 = vst [vmem:[#allocation2 + $0x8] sm:$0xff] %v501_v2  ;;  %v507_v5 = vld [vmem:[%s463_s19 + $0x28] sm:$0xff]  ;;  %504 = vst [vmem:[#allocation2] sm:$0xff] %v503_v3 }
  0x2b   : > { %506 = vst [vmem:[#allocation2 + $0x18] sm:$0xff] %v505_v4  ;;  %508 = vst [vmem:[#allocation2 + $0x20] sm:$0xff] %v507_v5 }
  0x2c   : > { %516 = vsyncadd [#allocation3], 768 }
  0x2d   : > { %2633 = dma.done.wait [#allocation3], 768 }
  0x2e   : > { %2634 = vsyncadd [#allocation3], 4294966528 }
  0x2f PF: > { %v2671_v13 = vmov 0.0   ;;  %v2535_v15 = vld [vmem:[%s2806_s20 + $0x8] sm:$0xff]   ;;  %vm2672_vm0 = vmmov 0   ;;  %s2673_s2 = smov 96   ;;  %v2536_v16 = vld [vmem:[%s2806_s20] sm:$0xff]   ;;  %vm545_vm1 = vcmask 261120  }
  0x30   : > { %v520_v8 = vld [vmem:[#allocation2 + $0x28] sm:$0xff]  ;;  %v521_v10 = vld [vmem:[#allocation2 + $0x10] sm:$0xff]  ;;  %2199 = vmatprep.subr.bf16.mxu0 %v2671_v13  ;;  %2215 = vmatprep.subr.bf16.mxu1 %v2671_v13  ;;  %s2674_s27 = smov 64   ;;  %s2675_s20 = smov 32   ;;  %vm909_vm2 = vcmask 523264   ;;  %vm916_vm3 = vcmask 785408  }
  0x31   : > { %v522_v11 = vld [vmem:[#allocation2 + $0x8] sm:$0xff]  ;;  %v523_v12 = vld [vmem:[#allocation2] sm:$0xff]  ;;  %v526_v14 = vpack.c.bf16 %v521_v10, %v520_v8  ;;  %2203 = vmatprep.mubr.msk.bf16.mxu0 %vm2672_vm0, %v2671_v13  ;;  %2219 = vmatprep.mubr.msk.bf16.mxu1 %vm2672_vm0, %v2671_v13  ;;  %vm947_vm4 = vcmask 392192   ;;  %p2139_p0 = scmp.ge.s32.totalorder %s2653_s12, 1 }
  0x32   : > { %v524_v6 = vld [vmem:[#allocation2 + $0x18] sm:$0xff]  ;;  %v525_v7 = vld [vmem:[#allocation2 + $0x20] sm:$0xff]  ;;  %v527_v17 = vpack.c.bf16 %v523_v12, %v522_v11  ;;  %2200 = vmatpush3.bf16.msra.mxu0 %v2535_v15  ;;  %2216 = vmatpush3.bf16.msra.mxu1 %v2535_v15 }
  0x33   : > { %v528_v9 = vpack.c.bf16 %v525_v7, %v524_v6  ;;  %615 = vrot.lane.b32.xlu0 %v526_v14, %s2673_s2  ;;  %2201 = vmatprep.subr.bf16.mxu0 %v2671_v13 }
  0x34   : > { %2217 = vmatprep.subr.bf16.mxu1 %v2671_v13 }
  0x35   : > { %619 = vrot.lane.b32.xlu1 %v528_v9, %s2673_s2 }
  0x36   : > { %2202 = vmatpush3.bf16.msra.mxu0 %v2536_v16  ;;  %2218 = vmatpush3.bf16.msra.mxu1 %v2536_v16 }
  0x37   : > { %617 = vrot.lane.b32.xlu0 %v527_v17, %s2673_s2  ;;  %2231 = vmatprep.subr.bf16.mxu0 %v2671_v13 }
  0x38   : > { %2247 = vmatprep.subr.bf16.mxu1 %v2671_v13 }
  0x39   : > { %687 = vrot.lane.b32.xlu1 %v526_v14, %s2674_s27  ;;  %2204 = vmatmul.mubr.msk.bf16.vlgmr.msra.gmra.mxu0 %vm545_vm1, %v526_v14 }
  0x3a   : > { %2207 = vmatprep.mubr.msk.bf16.mxu0 %vm2672_vm0, %v2671_v13  ;;  %2232 = vmatpush3.bf16.msra.mxu0 %v2535_v15 }
  0x3b   : > { %759 = vrot.lane.b32.xlu0 %v526_v14, %s2675_s20  ;;  %2233 = vmatprep.subr.bf16.mxu0 %v2671_v13 }
  0x3d   : > { %689 = vrot.lane.b32.xlu1 %v527_v17, %s2674_s27 }
  0x3e   : > { %2234 = vmatpush3.bf16.msra.mxu0 %v2536_v16 }
  0x3f   : > { %761 = vrot.lane.b32.xlu0 %v527_v17, %s2675_s20  ;;  %2263 = vmatprep.subr.bf16.mxu0 %v2671_v13 }
  0x41   : > { %691 = vrot.lane.b32.xlu1 %v528_v9, %s2674_s27  ;;  %2208 = vmatmul.mubr.msk.bf16.gmra.mxu0 %vm545_vm1, %v527_v17 }
  0x42   : > { %2211 = vmatprep.mubr.msk.bf16.mxu0 %vm2672_vm0, %v2671_v13 }
  0x43   : > { %763 = vrot.lane.b32.xlu0 %v528_v9, %s2675_s20 }
  0x49   : > { %2212 = vmatmul.mubr.msk.bf16.gmra.mxu0 %vm545_vm1, %v528_v9 }
  0x4a   : > { %2235 = vmatprep.mubr.msk.bf16.mxu0 %vm2672_vm0, %v2671_v13 }
  0xa5   : > { %v616_v19 = vpop.permute.xlu0 %615 }
  0xa6   : > { %2220 = vmatmul.mubr.msk.bf16.vlgmr.msra.gmra.mxu1 %vm545_vm1, %v616_v19 }
  0xa7   : > { %v620_v18 = vpop.permute.xlu1 %619  ;;  %2223 = vmatprep.mubr.msk.bf16.mxu1 %vm2672_vm0, %v2671_v13  ;;  %2248 = vmatpush3.bf16.msra.mxu1 %v2535_v15 }
  0xa8   : > { %2249 = vmatprep.subr.bf16.mxu1 %v2671_v13 }
  0xa9   : > { %v618_v21 = vpop.permute.xlu0 %617 }
  0xab   : > { %v688_v20 = vpop.permute.xlu1 %687  ;;  %2250 = vmatpush3.bf16.msra.mxu1 %v2536_v16 }
  0xac   : > { %2236 = vmatmul.mubr.msk.bf16.vlgmr.msra.gmra.mxu0 %vm545_vm1, %v688_v20  ;;  %2281 = vmatprep.subr.bf16.mxu1 %v2671_v13 }
  0xad   : > { %2239 = vmatprep.mubr.msk.bf16.mxu0 %vm2672_vm0, %v2671_v13  ;;  %v760_v24 = vpop.permute.xlu0 %759 }
  0xae   : > { %2224 = vmatmul.mubr.msk.bf16.gmra.mxu1 %vm545_vm1, %v618_v21  ;;  %v2933_v21 = vld [vmem:[%s2821_s16 + $0x8] sm:$0xff] }
  0xaf   : > { %v690_v22 = vpop.permute.xlu1 %689  ;;  %2227 = vmatprep.mubr.msk.bf16.mxu1 %vm2672_vm0, %v2671_v13 }
  0xb1   : > { %v762_v25 = vpop.permute.xlu0 %761 }
  0xb3   : > { %v692_v23 = vpop.permute.xlu1 %691 }
  0xb4   : > { %2240 = vmatmul.mubr.msk.bf16.gmra.mxu0 %vm545_vm1, %v690_v22  ;;  %v2936_v22 = vld [vmem:[%s2821_s16] sm:$0xff] }
  0xb5   : > { %2243 = vmatprep.mubr.msk.bf16.mxu0 %vm2672_vm0, %v2671_v13  ;;  %v764_v26 = vpop.permute.xlu0 %763 }
  0xb6   : > { %2228 = vmatmul.mubr.msk.bf16.gmra.mxu1 %vm545_vm1, %v620_v18 }
  0xb7   : > { %2251 = vmatprep.mubr.msk.bf16.mxu1 %vm2672_vm0, %v2671_v13 }
  0xbc   : > { %2244 = vmatmul.mubr.msk.bf16.gmra.mxu0 %vm545_vm1, %v692_v23  ;;  %v2951_v23 = vld [vmem:[%s2826_s18 + $0x8] sm:$0xff] }
  0xbd   : > { %2269 = vmatprep.mubr.msk.bf16.mxu0 %vm2672_vm0, %v2671_v13 }
  0xbe   : > { %2252 = vmatmul.mubr.msk.bf16.vlgmr.msra.gmra.mxu1 %vm545_vm1, %v760_v24  ;;  %v2954_v24 = vld [vmem:[%s2826_s18] sm:$0xff] }
  0xbf   : > { %2255 = vmatprep.mubr.msk.bf16.mxu1 %vm2672_vm0, %v2671_v13 }
  0xc6   : > { %2256 = vmatmul.mubr.msk.bf16.gmra.mxu1 %vm545_vm1, %v762_v25  ;;  %v2969_v25 = vld [vmem:[%s2821_s16 + $0x18] sm:$0xff] }
  0xc7   : > { %2259 = vmatprep.mubr.msk.bf16.mxu1 %vm2672_vm0, %v2671_v13 }
  0xce   : > { %2260 = vmatmul.mubr.msk.bf16.gmra.mxu1 %vm545_vm1, %v764_v26  ;;  %v2972_v26 = vld [vmem:[%s2821_s16 + $0x10] sm:$0xff] }
  0xcf   : > { %2285 = vmatprep.mubr.msk.bf16.mxu1 %vm2672_vm0, %v2671_v13 }
  0xf9   : > { %v2911_v27 = vpop.f32.mrf.mxu0 }
  0xfb   : > { %v2205_v28 = vpop.f32.mrf.mxu0 }
  0xfc   : > { %v2987_v28 = vld [vmem:[%s2826_s18 + $0x18] sm:$0xff] }
  0xfd   : > { %v2913_v29 = vpop.f32.mrf.mxu0 }
  0xff   : > { %v2206_v30 = vpop.f32.mrf.mxu0 }
 0x100   : > { %v2990_v30 = vld [vmem:[%s2826_s18 + $0x10] sm:$0xff] }
 0x101   : > { %v2915_v31 = vpop.f32.mrf.mxu0 }
 0x103   : > { %v2209_v32 = vpop.f32.mrf.mxu0 }
 0x104   : > { %v3005_v32 = vld [vmem:[%s2821_s16 + $0x28] sm:$0xff] }
 0x105   : > { %v2917_v33 = vpop.f32.mrf.mxu0 }
 0x107   : > { %v2210_v34 = vpop.f32.mrf.mxu0 }
 0x108   : > { %v3008_v34 = vld [vmem:[%s2821_s16 + $0x20] sm:$0xff] }
 0x109   : > { %v2919_v35 = vpop.f32.mrf.mxu0 }
 0x10b   : > { %v2213_v36 = vpop.f32.mrf.mxu0 }
 0x10c   : > { %v3023_v36 = vld [vmem:[%s2826_s18 + $0x28] sm:$0xff] }
 0x10d   : > { %v2921_v37 = vpop.f32.mrf.mxu0 }
 0x10f   : > { %v2214_v38 = vpop.f32.mrf.mxu0 }
 0x110   : > { %v3026_v38 = vld [vmem:[%s2826_s18 + $0x20] sm:$0xff] }
 0x166   : > { %v664_v39 = vpop.f32.mrf.mxu1 }
 0x168   : > { %v2221_v40 = vpop.f32.mrf.mxu1 }
 0x16a   : > { %v667_v42 = vpop.f32.mrf.mxu1 }
 0x16b   : > { %v2475_v19 = vpack.i.bf16 %v667_v42, %v664_v39 }
 0x16c   : > { %v736_v41 = vpop.f32.mrf.mxu0  ;;  %v2222_v44 = vpop.f32.mrf.mxu1 }
 0x16e   : > { %v2237_v43 = vpop.f32.mrf.mxu0  ;;  %v672_v46 = vpop.f32.mrf.mxu1 }
 0x170   : > { %v739_v45 = vpop.f32.mrf.mxu0  ;;  %v2225_v48 = vpop.f32.mrf.mxu1 }
 0x171   : > { %v2480_v14 = vpack.i.bf16 %v739_v45, %v736_v41 }
 0x172   : > { %v2238_v47 = vpop.f32.mrf.mxu0  ;;  %v675_v50 = vpop.f32.mrf.mxu1 }
 0x173   : > { %v2445_v51 = vpack.i.bf16 %v675_v50, %v672_v46 }
 0x174   : > { %v744_v49 = vpop.f32.mrf.mxu0  ;;  %v2226_v53 = vpop.f32.mrf.mxu1 }
 0x175   : > { %2446 = vrot.lane.b32.xlu0 %v2445_v51, %s2675_s20 }
 0x176   : > { %v2241_v52 = vpop.f32.mrf.mxu0  ;;  %v680_v55 = vpop.f32.mrf.mxu1 }
 0x178   : > { %v747_v54 = vpop.f32.mrf.mxu0  ;;  %v2229_v58 = vpop.f32.mrf.mxu1 }
 0x179   : > { %v2450_v56 = vpack.i.bf16 %v747_v54, %v744_v49 }
 0x17a   : > { %v2242_v57 = vpop.f32.mrf.mxu0  ;;  %v683_v60 = vpop.f32.mrf.mxu1 }
 0x17b   : > { %2451 = vrot.lane.b32.xlu1 %v2450_v56, %s2674_s27  ;;  %v2455_v61 = vpack.i.bf16 %v683_v60, %v680_v55 }
 0x17c   : > { %v752_v59 = vpop.f32.mrf.mxu0  ;;  %v2230_v63 = vpop.f32.mrf.mxu1 }
 0x17e   : > { %v2245_v62 = vpop.f32.mrf.mxu0  ;;  %v808_v2 = vpop.f32.mrf.mxu1 }
 0x17f   : > { %2456 = vrot.lane.b32.xlu1 %v2455_v61, %s2675_s20 }
 0x180   : > { %v755_v0 = vpop.f32.mrf.mxu0  ;;  %v2253_v4 = vpop.f32.mrf.mxu1 }
 0x181   : > { %v2460_v1 = vpack.i.bf16 %v755_v0, %v752_v59 }
 0x182   : > { %v2246_v3 = vpop.f32.mrf.mxu0  ;;  %v811_v5 = vpop.f32.mrf.mxu1 }
 0x183   : > { %2461 = vrot.lane.b32.xlu0 %v2460_v1, %s2674_s27  ;;  %v2485_v20 = vpack.i.bf16 %v811_v5, %v808_v2 }
 0x184   : > { %v2254_v6 = vpop.f32.mrf.mxu1 }
 0x186   : > { %v816_v7 = vpop.f32.mrf.mxu1 }
 0x188   : > { %v2257_v8 = vpop.f32.mrf.mxu1 }
 0x18a   : > { %v819_v9 = vpop.f32.mrf.mxu1 }
 0x18b   : > { %v2465_v10 = vpack.i.bf16 %v819_v9, %v816_v7 }
 0x18c   : > { %v2258_v11 = vpop.f32.mrf.mxu1 }
 0x18d   : > { %2466 = vrot.lane.b32.xlu0 %v2465_v10, %s2673_s2 }
 0x18e   : > { %v824_v12 = vpop.f32.mrf.mxu1 }
 0x190   : > { %v2261_v15 = vpop.f32.mrf.mxu1 }
 0x191   : > { %2481 = vrot.lane.b32.xlu0 %v2480_v14, %s2674_s27 }
 0x192   : > { %v827_v16 = vpop.f32.mrf.mxu1 }
 0x193   : > { %v2470_v17 = vpack.i.bf16 %v827_v16, %v824_v12 }
 0x194   : > { %v2262_v18 = vpop.f32.mrf.mxu1 }
 0x195   : > { %2471 = vrot.lane.b32.xlu1 %v2470_v17, %s2673_s2  ;;  %1026 = vrot.lane.b32.xlu0 %v2936_v22, %s2675_s20  ;;  %v2537_v18 = vld [vmem:[%s2811_s14] sm:$0xff]  }
 0x199   : > { %2476 = vrot.lane.b32.xlu1 %v2475_v19, %s2675_s20  ;;  %1044 = vrot.lane.b32.xlu0 %v2936_v22, %s2674_s27  ;;  %v2538_v19 = vld [vmem:[%s2811_s14 + $0x8] sm:$0xff]  }
 0x19d   : > { %2486 = vrot.lane.b32.xlu1 %v2485_v20, %s2673_s2  ;;  %1062 = vrot.lane.b32.xlu0 %v2936_v22, %s2673_s2  ;;  %v2539_v20 = vld [vmem:[%s2811_s14 + $0x10] sm:$0xff]  }
 0x1a1   : > { %1028 = vrot.lane.b32.xlu1 %v2933_v21, %s2675_s20  ;;  %1110 = vrot.lane.b32.xlu0 %v2954_v24, %s2675_s20 }
 0x1a5   : > { %1046 = vrot.lane.b32.xlu1 %v2933_v21, %s2674_s27  ;;  %1128 = vrot.lane.b32.xlu0 %v2954_v24, %s2674_s27 }
 0x1a9   : > { %1064 = vrot.lane.b32.xlu1 %v2933_v21, %s2673_s2  ;;  %1146 = vrot.lane.b32.xlu0 %v2954_v24, %s2673_s2 }
 0x1ad   : > { %1112 = vrot.lane.b32.xlu1 %v2951_v23, %s2675_s20  ;;  %1030 = vrot.lane.b32.xlu0 %v2972_v26, %s2675_s20 }
 0x1b1   : > { %1130 = vrot.lane.b32.xlu1 %v2951_v23, %s2674_s27  ;;  %1048 = vrot.lane.b32.xlu0 %v2972_v26, %s2674_s27 }
 0x1b5   : > { %1148 = vrot.lane.b32.xlu1 %v2951_v23, %s2673_s2  ;;  %1066 = vrot.lane.b32.xlu0 %v2972_v26, %s2673_s2 }
 0x1b9   : > { %1032 = vrot.lane.b32.xlu1 %v2969_v25, %s2675_s20  ;;  %1114 = vrot.lane.b32.xlu0 %v2990_v30, %s2675_s20 }
 0x1bd   : > { %1050 = vrot.lane.b32.xlu1 %v2969_v25, %s2674_s27  ;;  %1132 = vrot.lane.b32.xlu0 %v2990_v30, %s2674_s27 }
 0x1c1   : > { %1068 = vrot.lane.b32.xlu1 %v2969_v25, %s2673_s2  ;;  %1150 = vrot.lane.b32.xlu0 %v2990_v30, %s2673_s2 }
 0x1c5   : > { %1116 = vrot.lane.b32.xlu1 %v2987_v28, %s2675_s20  ;;  %1034 = vrot.lane.b32.xlu0 %v3008_v34, %s2675_s20 }
 0x1c9   : > { %1134 = vrot.lane.b32.xlu1 %v2987_v28, %s2674_s27  ;;  %1052 = vrot.lane.b32.xlu0 %v3008_v34, %s2674_s27 }
 0x1cd   : > { %1152 = vrot.lane.b32.xlu1 %v2987_v28, %s2673_s2  ;;  %1070 = vrot.lane.b32.xlu0 %v3008_v34, %s2673_s2 }
 0x1d1   : > { %1036 = vrot.lane.b32.xlu1 %v3005_v32, %s2675_s20  ;;  %1118 = vrot.lane.b32.xlu0 %v3026_v38, %s2675_s20 }
 0x1d5   : > { %1054 = vrot.lane.b32.xlu1 %v3005_v32, %s2674_s27  ;;  %1136 = vrot.lane.b32.xlu0 %v3026_v38, %s2674_s27 }
 0x1d9   : > { %1072 = vrot.lane.b32.xlu1 %v3005_v32, %s2673_s2  ;;  %1154 = vrot.lane.b32.xlu0 %v3026_v38, %s2673_s2 }
 0x1dd   : > { %1120 = vrot.lane.b32.xlu1 %v3023_v36, %s2675_s20 }
 0x1e1   : > { %1138 = vrot.lane.b32.xlu1 %v3023_v36, %s2674_s27 }
 0x1e5   : > { %1156 = vrot.lane.b32.xlu1 %v3023_v36, %s2673_s2 }
 0x1e7   : > { %v2447_v40 = vpop.permute.xlu0 %2446 }
 0x1e8   : > { %v2449_v48 = vunpack.i.h.bf16 %v2447_v40  ;;  %v2448_v49 = vunpack.i.l.bf16 %v2447_v40  ;;  %v3087_v40 = vld [vmem:[%s2816_s22] sm:$0xff]  }
 0x1ea   : > { %v905_v61 = vsel %vm545_vm1, %v2915_v31, %v2448_v49  ;;  %v906_v62 = vsel %vm545_vm1, %v2917_v33, %v2449_v48 }
 0x1ed   : > { %v2452_v39 = vpop.permute.xlu1 %2451 }
 0x1ee   : > { %v2454_v50 = vunpack.i.h.bf16 %v2452_v39  ;;  %v2453_v51 = vunpack.i.l.bf16 %v2452_v39  ;;  %v3080_v39 = vld [vmem:[%s2816_s22 + $0x8] sm:$0xff]  }
 0x1ef   : > { %2282 = vmatpush3.bf16.msra.mxu1 %v3080_v39 }
 0x1f0   : > { %v913_v63 = vsel %vm909_vm2, %v906_v62, %v2454_v50  ;;  %v912_v0 = vsel %vm909_vm2, %v905_v61, %v2453_v51  ;;  %2283 = vmatprep.subr.bf16.mxu1 %v2671_v13 }
 0x1f1   : > { %v2457_v41 = vpop.permute.xlu1 %2456 }
 0x1f2   : > { %v2459_v43 = vunpack.i.h.bf16 %v2457_v41  ;;  %v2458_v44 = vunpack.i.l.bf16 %v2457_v41 }
 0x1f3   : > { %2284 = vmatpush3.bf16.msra.mxu1 %v3087_v40 }
 0x1f4   : > { %v908_v52 = vsel %vm545_vm1, %v2921_v37, %v2459_v43  ;;  %v907_v53 = vsel %vm545_vm1, %v2919_v35, %v2458_v44  ;;  %2313 = vmatprep.subr.bf16.mxu1 %v2671_v13 }
 0x1f5   : > { %v2462_v42 = vpop.permute.xlu0 %2461 }
 0x1f6   : > { %v2464_v45 = vunpack.i.h.bf16 %v2462_v42  ;;  %v2463_v46 = vunpack.i.l.bf16 %v2462_v42 }
 0x1f8   : > { %v915_v59 = vsel %vm909_vm2, %v908_v52, %v2464_v45  ;;  %v914_v60 = vsel %vm909_vm2, %v907_v53, %v2463_v46 }
 0x1ff   : > { %v2467_v47 = vpop.permute.xlu0 %2466 }
 0x200   : > { %v2469_v55 = vunpack.i.h.bf16 %v2467_v47  ;;  %v2468_v56 = vunpack.i.l.bf16 %v2467_v47 }
 0x202   : > { %v920_v3 = vsel %vm916_vm3, %v913_v63, %v2469_v55  ;;  %v919_v4 = vsel %vm916_vm3, %v912_v0, %v2468_v56 }
 0x203   : > { %v2482_v5 = vpop.permute.xlu0 %2481  ;;  %v930_v8 = vpack.c.bf16 %v920_v3, %v919_v4 }
 0x204   : > { %v2484_v9 = vunpack.i.h.bf16 %v2482_v5  ;;  %v2483_v10 = vunpack.i.l.bf16 %v2482_v5 }
 0x207   : > { %v2472_v54 = vpop.permute.xlu1 %2471  ;;  %v1027_v41 = vpop.permute.xlu0 %1026 }
 0x208   : > { %v2474_v57 = vunpack.i.h.bf16 %v2472_v54  ;;  %v2473_v58 = vunpack.i.l.bf16 %v2472_v54 }
 0x20a   : > { %v921_v37 = vsel %vm916_vm3, %v914_v60, %v2473_v58  ;;  %v922_v35 = vsel %vm916_vm3, %v915_v59, %v2474_v57 }
 0x20b   : > { %v931_v1 = vpack.c.bf16 %v922_v35, %v921_v37  ;;  %v2477_v2 = vpop.permute.xlu1 %2476  ;;  %v1045_v43 = vpop.permute.xlu0 %1044 }
 0x20c   : > { %v2479_v6 = vunpack.i.h.bf16 %v2477_v2  ;;  %v2478_v31 = vunpack.i.l.bf16 %v2477_v2  ;;  %v1080_v2 = vsel %vm545_vm1, %v2936_v22, %v1027_v41 }
 0x20d   : > { %2264 = vmatpush3.bf16.msra.mxu0 %v931_v1  ;;  %v1086_v4 = vsel %vm909_vm2, %v1080_v2, %v1045_v43 }
 0x20e   : > { %v904_v33 = vsel %vm545_vm1, %v2913_v29, %v2479_v6  ;;  %v903_v7 = vsel %vm545_vm1, %v2911_v27, %v2478_v31  ;;  %2265 = vmatprep.subr.bf16.mxu0 %v2671_v13 }
 0x20f   : > { %v2487_v11 = vpop.permute.xlu1 %2486  ;;  %v910_v15 = vsel %vm909_vm2, %v903_v7, %v2483_v10  ;;  %v911_v16 = vsel %vm909_vm2, %v904_v33, %v2484_v9  ;;  %v1063_v45 = vpop.permute.xlu0 %1062 }
 0x210   : > { %v2489_v12 = vunpack.i.h.bf16 %v2487_v11  ;;  %v2488_v14 = vunpack.i.l.bf16 %v2487_v11  ;;  %v1092_v9 = vsel %vm916_vm3, %v1086_v4, %v1063_v45 }
 0x211   : > { %2266 = vmatpush3.bf16.msra.mxu0 %v930_v8 }
 0x212   : > { %v917_v29 = vsel %vm916_vm3, %v910_v15, %v2488_v14  ;;  %v918_v27 = vsel %vm916_vm3, %v911_v16, %v2489_v12  ;;  %2267 = vmatprep.subr.bf16.mxu0 %v2671_v13 }
 0x213   : > { %v929_v17 = vpack.c.bf16 %v918_v27, %v917_v29  ;;  %v1029_v42 = vpop.permute.xlu1 %1028  ;;  %v1111_v47 = vpop.permute.xlu0 %1110 }
 0x214   : > { %v1164_v5 = vsel %vm545_vm1, %v2954_v24, %v1111_v47  ;;  %v1081_v6 = vsel %vm545_vm1, %v2933_v21, %v1029_v42 }
 0x215   : > { %2268 = vmatpush3.bf16.msra.mxu0 %v929_v17 }
 0x216   : > { %2297 = vmatprep.subr.bf16.mxu0 %v2671_v13 }
 0x217   : > { %v1047_v44 = vpop.permute.xlu1 %1046  ;;  %v1129_v49 = vpop.permute.xlu0 %1128 }
 0x218   : > { %2270 = vmatmul.mubr.msk.bf16.vlgmr.msra.gmra.mxu0 %vm947_vm4, %v2537_v18  ;;  %v1170_v7 = vsel %vm909_vm2, %v1164_v5, %v1129_v49  ;;  %v1087_v22 = vsel %vm909_vm2, %v1081_v6, %v1047_v44 }
 0x219   : > { %2273 = vmatprep.mubr.msk.bf16.mxu0 %vm2672_vm0, %v2671_v13  ;;  %2298 = vmatpush3.bf16.msra.mxu0 %v3080_v39 }
 0x21a   : > { %2299 = vmatprep.subr.bf16.mxu0 %v2671_v13 }
 0x21b   : > { %v1065_v46 = vpop.permute.xlu1 %1064  ;;  %v1147_v51 = vpop.permute.xlu0 %1146 }
 0x21c   : > { %v1176_v21 = vsel %vm916_vm3, %v1170_v7, %v1147_v51 }
 0x21d   : > { %2300 = vmatpush3.bf16.msra.mxu0 %v3087_v40 }
 0x21e   : > { %2329 = vmatprep.subr.bf16.mxu0 %v2671_v13 }
 0x21f   : > { %v1113_v48 = vpop.permute.xlu1 %1112  ;;  %v1031_v53 = vpop.permute.xlu0 %1030 }
 0x220   : > { %2274 = vmatmul.mubr.msk.bf16.gmra.mxu0 %vm947_vm4, %v2538_v19  ;;  %v1165_v33 = vsel %vm545_vm1, %v2951_v23, %v1113_v48  ;;  %v1082_v12 = vsel %vm545_vm1, %v2972_v26, %v1031_v53  ;;  %v1093_v23 = vsel %vm916_vm3, %v1087_v22, %v1065_v46 }
 0x221   : > { %2277 = vmatprep.mubr.msk.bf16.mxu0 %vm2672_vm0, %v2671_v13 }
 0x223   : > { %v1131_v50 = vpop.permute.xlu1 %1130  ;;  %v1049_v55 = vpop.permute.xlu0 %1048 }
 0x224   : > { %v1171_v14 = vsel %vm909_vm2, %v1165_v33, %v1131_v50  ;;  %v1088_v27 = vsel %vm909_vm2, %v1082_v12, %v1049_v55 }
 0x227   : > { %v1149_v52 = vpop.permute.xlu1 %1148  ;;  %v1067_v57 = vpop.permute.xlu0 %1066 }
 0x228   : > { %2278 = vmatmul.mubr.msk.bf16.gmra.mxu0 %vm947_vm4, %v2539_v20  ;;  %v1177_v19 = vsel %vm916_vm3, %v1171_v14, %v1149_v52  ;;  %v1094_v46 = vsel %vm916_vm3, %v1088_v27, %v1067_v57 }
 0x229   : > { %2301 = vmatprep.mubr.msk.bf16.mxu0 %vm2672_vm0, %v2671_v13 }
 0x22b   : > { %v1033_v54 = vpop.permute.xlu1 %1032  ;;  %v1115_v59 = vpop.permute.xlu0 %1114 }
 0x22c   : > { %v1166_v17 = vsel %vm545_vm1, %v2990_v30, %v1115_v59  ;;  %v1083_v26 = vsel %vm545_vm1, %v2969_v25, %v1033_v54 }
 0x22f   : > { %v1051_v56 = vpop.permute.xlu1 %1050  ;;  %v1133_v61 = vpop.permute.xlu0 %1132 }
 0x230   : > { %v1172_v44 = vsel %vm909_vm2, %v1166_v17, %v1133_v61  ;;  %v1089_v30 = vsel %vm909_vm2, %v1083_v26, %v1051_v56 }
 0x233   : > { %v1069_v58 = vpop.permute.xlu1 %1068  ;;  %v1151_v37 = vpop.permute.xlu0 %1150 }
 0x234   : > { %v1178_v51 = vsel %vm916_vm3, %v1172_v44, %v1151_v37  ;;  %v1095_v53 = vsel %vm916_vm3, %v1089_v30, %v1069_v58 }
 0x237   : > { %v1117_v60 = vpop.permute.xlu1 %1116  ;;  %v1035_v63 = vpop.permute.xlu0 %1034 }
 0x238   : > { %v1167_v43 = vsel %vm545_vm1, %v2987_v28, %v1117_v60  ;;  %v1084_v48 = vsel %vm545_vm1, %v3008_v34, %v1035_v63 }
 0x23b   : > { %v1135_v62 = vpop.permute.xlu1 %1134  ;;  %v1053_v1 = vpop.permute.xlu0 %1052 }
 0x23c   : > { %v1173_v50 = vsel %vm909_vm2, %v1167_v43, %v1135_v62  ;;  %v1090_v54 = vsel %vm909_vm2, %v1084_v48, %v1053_v1 }
 0x23f   : > { %v1153_v35 = vpop.permute.xlu1 %1152  ;;  %v1071_v31 = vpop.permute.xlu0 %1070 }
 0x240   : > { %v1179_v59 = vsel %vm916_vm3, %v1173_v50, %v1153_v35  ;;  %v1096_v1 = vsel %vm916_vm3, %v1090_v54, %v1071_v31 }
 0x243   : > { %v1037_v0 = vpop.permute.xlu1 %1036  ;;  %v1119_v29 = vpop.permute.xlu0 %1118 }
 0x244   : > { %v1168_v55 = vsel %vm545_vm1, %v3026_v38, %v1119_v29  ;;  %v1085_v34 = vsel %vm545_vm1, %v3005_v32, %v1037_v0 }
 0x247   : > { %v1055_v3 = vpop.permute.xlu1 %1054  ;;  %v1137_v49 = vpop.permute.xlu0 %1136 }
 0x248   : > { %v1174_v58 = vsel %vm909_vm2, %v1168_v55, %v1137_v49  ;;  %v1091_v38 = vsel %vm909_vm2, %v1085_v34, %v1055_v3 }
 0x24b   : > { %v1073_v11 = vpop.permute.xlu1 %1072  ;;  %v1155_v37 = vpop.permute.xlu0 %1154 }
 0x24c   : > { %v1180_v0 = vsel %vm916_vm3, %v1174_v58, %v1155_v37 }
 0x24f   : > { %v1121_v42 = vpop.permute.xlu1 %1120 }
 0x250   : > { %v1169_v62 = vsel %vm545_vm1, %v3023_v36, %v1121_v42  ;;  %v1097_v36 = vsel %vm916_vm3, %v1091_v38, %v1073_v11 }
 0x253   : > { %v1139_v56 = vpop.permute.xlu1 %1138 }
 0x254   : > { %v1175_v4 = vsel %vm909_vm2, %v1169_v62, %v1139_v56 }
 0x257   : > { %v1157_v32 = vpop.permute.xlu1 %1156 }
 0x2d8   : > { %v991_v8 = vpop.f32.mrf.mxu0 }
 0x2d9   : > { %v1182_v10 = vmul.f32 %v1092_v9, %v991_v8  ;;  %v1181_v9 = vsel %vm916_vm3, %v1175_v4, %v1157_v32 }
 0x2da   : > { %v2271_v24 = vpop.f32.mrf.mxu0 }
 0x2db   : > { %v1188_v15 = vadd.f32 %v1182_v10, %v1176_v21 }
 0x2dc   : > { %v994_v16 = vpop.f32.mrf.mxu0 }
 0x2dd   : > { %v1183_v18 = vmul.f32 %v1093_v23, %v994_v16  ;;  %2545 = vtanh.f32 %v1188_v15 }
 0x2de   : > { %v2272_v20 = vpop.f32.mrf.mxu0 }
 0x2df   : > { %v1189_v41 = vadd.f32 %v1183_v18, %v1177_v19 }
 0x2e0   : > { %v999_v45 = vpop.f32.mrf.mxu0 }
 0x2e1   : > { %2547 = vtanh.f32 %v1189_v41  ;;  %v1184_v47 = vmul.f32 %v1094_v46, %v999_v45 }
 0x2e2   : > { %v2275_v25 = vpop.f32.mrf.mxu0 }
 0x2e3   : > { %v1190_v28 = vadd.f32 %v1184_v47, %v1178_v51 }
 0x2e4   : > { %v1002_v52 = vpop.f32.mrf.mxu0 }
 0x2e5   : > { %v1185_v57 = vmul.f32 %v1095_v53, %v1002_v52  ;;  %2549 = vtanh.f32 %v1190_v28 }
 0x2e6   : > { %v2276_v60 = vpop.f32.mrf.mxu0 }
 0x2e7   : > { %v1191_v61 = vadd.f32 %v1185_v57, %v1179_v59 }
 0x2e8   : > { %v1007_v63 = vpop.f32.mrf.mxu0 }
 0x2e9   : > { %2551 = vtanh.f32 %v1191_v61  ;;  %v1186_v2 = vmul.f32 %v1096_v1, %v1007_v63 }
 0x2ea   : > { %v2279_v35 = vpop.f32.mrf.mxu0  ;;  %v2546_v33 = vpop.eup %2545 }
 0x2eb   : > { %v1192_v5 = vadd.f32 %v1186_v2, %v1180_v0 }
 0x2ec   : > { %v1010_v6 = vpop.f32.mrf.mxu0 }
 0x2ed   : > { %v1187_v7 = vmul.f32 %v1097_v36, %v1010_v6  ;;  %2553 = vtanh.f32 %v1192_v5 }
 0x2ee   : > { %v2548_v8 = vpop.eup %2547  ;;  %v2280_v31 = vpop.f32.mrf.mxu0 }
 0x2ef   : > { %v1193_v22 = vadd.f32 %v1187_v7, %v1181_v9  ;;  %v1200_v3 = vpack.c.bf16 %v2548_v8, %v2546_v33 }
 0x2f1   : > { %2555 = vtanh.f32 %v1193_v22  ;;  %1288 = vrot.lane.b32.xlu0 %v1200_v3, %s2673_s2  ;;  %2286 = vmatmul.mubr.msk.bf16.vlgmr.msra.gmra.mxu1 %vm545_vm1, %v1200_v3 }
 0x2f2   : > { %2289 = vmatprep.mubr.msk.bf16.mxu1 %vm2672_vm0, %v2671_v13  ;;  %2314 = vmatpush3.bf16.msra.mxu1 %v3080_v39  ;;  %v2550_v10 = vpop.eup %2549 }
 0x2f3   : > { %2315 = vmatprep.subr.bf16.mxu1 %v2671_v13 }
 0x2f6   : > { %v2552_v11 = vpop.eup %2551  ;;  %2316 = vmatpush3.bf16.msra.mxu1 %v3087_v40 }
 0x2f7   : > { %v1201_v12 = vpack.c.bf16 %v2552_v11, %v2550_v10  ;;  %2345 = vmatprep.subr.bf16.mxu1 %v2671_v13 }
 0x2f9   : > { %1290 = vrot.lane.b32.xlu1 %v1201_v12, %s2673_s2  ;;  %2290 = vmatmul.mubr.msk.bf16.gmra.mxu1 %vm545_vm1, %v1201_v12 }
 0x2fa   : > { %2293 = vmatprep.mubr.msk.bf16.mxu1 %vm2672_vm0, %v2671_v13  ;;  %v2554_v24 = vpop.eup %2553 }
 0x2fd   : > { %1360 = vrot.lane.b32.xlu1 %v1200_v3, %s2674_s27 }
 0x2fe   : > { %v2556_v14 = vpop.eup %2555 }
 0x2ff   : > { %v1202_v21 = vpack.c.bf16 %v2556_v14, %v2554_v24 }
 0x301   : > { %1362 = vrot.lane.b32.xlu1 %v1201_v12, %s2674_s27  ;;  %1292 = vrot.lane.b32.xlu0 %v1202_v21, %s2673_s2 }
 0x302   : > { %2294 = vmatmul.mubr.msk.bf16.gmra.mxu1 %vm545_vm1, %v1202_v21 }
 0x303   : > { %2317 = vmatprep.mubr.msk.bf16.mxu1 %vm2672_vm0, %v2671_v13 }
 0x305   : > { %1364 = vrot.lane.b32.xlu1 %v1202_v21, %s2674_s27  ;;  %1432 = vrot.lane.b32.xlu0 %v1200_v3, %s2675_s20 }
 0x309   : > { %1434 = vrot.lane.b32.xlu0 %v1201_v12, %s2675_s20 }
 0x30d   : > { %1436 = vrot.lane.b32.xlu0 %v1202_v21, %s2675_s20 }
 0x363   : > { %v1289_v15 = vpop.permute.xlu0 %1288 }
 0x364   : > { %2302 = vmatmul.mubr.msk.bf16.vlgmr.msra.gmra.mxu0 %vm545_vm1, %v1289_v15 }
 0x365   : > { %2305 = vmatprep.mubr.msk.bf16.mxu0 %vm2672_vm0, %v2671_v13  ;;  %2330 = vmatpush3.bf16.msra.mxu0 %v3080_v39 }
 0x366   : > { %2331 = vmatprep.subr.bf16.mxu0 %v2671_v13 }
 0x369   : > { %2332 = vmatpush3.bf16.msra.mxu0 %v3087_v40 }
 0x36b   : > { %v1291_v16 = vpop.permute.xlu1 %1290 }
 0x36c   : > { %2306 = vmatmul.mubr.msk.bf16.gmra.mxu0 %vm545_vm1, %v1291_v16 }
 0x36d   : > { %2309 = vmatprep.mubr.msk.bf16.mxu0 %vm2672_vm0, %v2671_v13 }
 0x36f   : > { %v1361_v23 = vpop.permute.xlu1 %1360 }
 0x370   : > { %2318 = vmatmul.mubr.msk.bf16.vlgmr.msra.gmra.mxu1 %vm545_vm1, %v1361_v23 }
 0x371   : > { %2321 = vmatprep.mubr.msk.bf16.mxu1 %vm2672_vm0, %v2671_v13 }
 0x373   : > { %v1293_v29 = vpop.permute.xlu0 %1292  ;;  %v1363_v39 = vpop.permute.xlu1 %1362 }
 0x374   : > { %2310 = vmatmul.mubr.msk.bf16.gmra.mxu0 %vm545_vm1, %v1293_v29  ;;  %v3213_v29 = vld [vmem:[%s2836_s11] sm:$0xff] }
 0x375   : > { %2333 = vmatprep.mubr.msk.bf16.mxu0 %vm2672_vm0, %v2671_v13 }
 0x377   : > { %v1433_v40 = vpop.permute.xlu0 %1432  ;;  %v1365_v27 = vpop.permute.xlu1 %1364 }
 0x378   : > { %2322 = vmatmul.mubr.msk.bf16.gmra.mxu1 %vm545_vm1, %v1363_v39  ;;  %v3216_v39 = vld [vmem:[%s2836_s11 + $0x8] sm:$0xff] }
 0x379   : > { %2325 = vmatprep.mubr.msk.bf16.mxu1 %vm2672_vm0, %v2671_v13 }
 0x37b   : > { %v1435_v17 = vpop.permute.xlu0 %1434 }
 0x37c   : > { %2334 = vmatmul.mubr.msk.bf16.vlgmr.msra.gmra.mxu0 %vm545_vm1, %v1433_v40  ;;  %v3223_v40 = vld [vmem:[%s2836_s11 + $0x10] sm:$0xff] }
 0x37d   : > { %2337 = vmatprep.mubr.msk.bf16.mxu0 %vm2672_vm0, %v2671_v13 }
 0x37f   : > { %v1437_v18 = vpop.permute.xlu0 %1436 }
 0x380   : > { %2326 = vmatmul.mubr.msk.bf16.gmra.mxu1 %vm545_vm1, %v1365_v27  ;;  %v3226_v27 = vld [vmem:[%s2836_s11 + $0x18] sm:$0xff] }
 0x381   : > { %2351 = vmatprep.mubr.msk.bf16.mxu1 %vm2672_vm0, %v2671_v13 }
 0x384   : > { %2338 = vmatmul.mubr.msk.bf16.gmra.mxu0 %vm545_vm1, %v1435_v17  ;;  %v3233_v17 = vld [vmem:[%s2836_s11 + $0x20] sm:$0xff] }
 0x385   : > { %2341 = vmatprep.mubr.msk.bf16.mxu0 %vm2672_vm0, %v2671_v13 }
 0x38c   : > { %2342 = vmatmul.mubr.msk.bf16.gmra.mxu0 %vm545_vm1, %v1437_v18  ;;  %v3236_v18 = vld [vmem:[%s2836_s11 + $0x28] sm:$0xff] }
 0x3b1   : > { %v3191_v19 = vpop.f32.mrf.mxu1 }
 0x3b3   : > { %v2287_v26 = vpop.f32.mrf.mxu1 }
 0x3b4   : > { %v3267_v26 = vld [vmem:[%s2841_s30] sm:$0xff] }
 0x3b5   : > { %v3193_v20 = vpop.f32.mrf.mxu1 }
 0x3b7   : > { %v2288_v41 = vpop.f32.mrf.mxu1 }
 0x3b8   : > { %v3270_v41 = vld [vmem:[%s2841_s30 + $0x8] sm:$0xff] }
 0x3b9   : > { %v3195_v42 = vpop.f32.mrf.mxu1 }
 0x3bb   : > { %v2291_v43 = vpop.f32.mrf.mxu1 }
 0x3bc   : > { %v3277_v43 = vld [vmem:[%s2841_s30 + $0x10] sm:$0xff] }
 0x3bd   : > { %v3197_v44 = vpop.f32.mrf.mxu1 }
 0x3bf   : > { %v2292_v45 = vpop.f32.mrf.mxu1 }
 0x3c0   : > { %v3280_v45 = vld [vmem:[%s2841_s30 + $0x18] sm:$0xff] }
 0x3c2   : > { %v3199_v46 = vpop.f32.mrf.mxu1 }
 0x3c4   : > { %v2295_v30 = vpop.f32.mrf.mxu1 }
 0x3c5   : > { %v3287_v30 = vld [vmem:[%s2841_s30 + $0x20] sm:$0xff] }
 0x3c6   : > { %v3201_v47 = vpop.f32.mrf.mxu1 }
 0x3c8   : > { %v2296_v48 = vpop.f32.mrf.mxu1 }
 0x3c9   : > { %v3290_v48 = vld [vmem:[%s2841_s30 + $0x28] sm:$0xff] }
 0x424   : > { %v1337_v25 = vpop.f32.mrf.mxu0 }
 0x426   : > { %v2303_v49 = vpop.f32.mrf.mxu0 }
 0x428   : > { %v1340_v50 = vpop.f32.mrf.mxu0 }
 0x429   : > { %v2520_v16 = vpack.i.bf16 %v1340_v50, %v1337_v25 }
 0x42a   : > { %v2304_v51 = vpop.f32.mrf.mxu0 }
 0x42c   : > { %v1345_v28 = vpop.f32.mrf.mxu0 }
 0x42e   : > { %v2307_v52 = vpop.f32.mrf.mxu0 }
 0x430   : > { %v1348_v53 = vpop.f32.mrf.mxu0  ;;  %v1409_v54 = vpop.f32.mrf.mxu1 }
 0x431   : > { %v2490_v55 = vpack.i.bf16 %v1348_v53, %v1345_v28 }
 0x432   : > { %v2308_v56 = vpop.f32.mrf.mxu0  ;;  %v2319_v57 = vpop.f32.mrf.mxu1 }
 0x433   : > { %2491 = vrot.lane.b32.xlu0 %v2490_v55, %s2675_s20 }
 0x434   : > { %v1353_v59 = vpop.f32.mrf.mxu0  ;;  %v1412_v34 = vpop.f32.mrf.mxu1 }
 0x435   : > { %v2525_v12 = vpack.i.bf16 %v1412_v34, %v1409_v54 }
 0x436   : > { %v2311_v60 = vpop.f32.mrf.mxu0  ;;  %v2320_v61 = vpop.f32.mrf.mxu1 }
 0x438   : > { %v1356_v62 = vpop.f32.mrf.mxu0  ;;  %v1417_v58 = vpop.f32.mrf.mxu1 }
 0x439   : > { %v2500_v5 = vpack.i.bf16 %v1356_v62, %v1353_v59 }
 0x43a   : > { %v2312_v37 = vpop.f32.mrf.mxu0  ;;  %v2323_v63 = vpop.f32.mrf.mxu1 }
 0x43c   : > { %v1420_v1 = vpop.f32.mrf.mxu1  ;;  %v1481_v38 = vpop.f32.mrf.mxu0 }
 0x43d   : > { %v2495_v2 = vpack.i.bf16 %v1420_v1, %v1417_v58 }
 0x43e   : > { %v2324_v35 = vpop.f32.mrf.mxu1  ;;  %v2335_v4 = vpop.f32.mrf.mxu0 }
 0x43f   : > { %2496 = vrot.lane.b32.xlu1 %v2495_v2, %s2674_s27 }
 0x440   : > { %v1425_v32 = vpop.f32.mrf.mxu1  ;;  %v1484_v0 = vpop.f32.mrf.mxu0 }
 0x441   : > { %v2530_v23 = vpack.i.bf16 %v1484_v0, %v1481_v38 }
 0x442   : > { %v2327_v6 = vpop.f32.mrf.mxu1  ;;  %v2336_v36 = vpop.f32.mrf.mxu0 }
 0x443   : > { %2501 = vrot.lane.b32.xlu1 %v2500_v5, %s2675_s20 }
 0x444   : > { %v1428_v33 = vpop.f32.mrf.mxu1  ;;  %v1489_v7 = vpop.f32.mrf.mxu0 }
 0x445   : > { %v2505_v8 = vpack.i.bf16 %v1428_v33, %v1425_v32 }
 0x446   : > { %v2328_v9 = vpop.f32.mrf.mxu1  ;;  %v2339_v31 = vpop.f32.mrf.mxu0 }
 0x447   : > { %2506 = vrot.lane.b32.xlu0 %v2505_v8, %s2674_s27 }
 0x448   : > { %v1492_v22 = vpop.f32.mrf.mxu0 }
 0x449   : > { %v2510_v3 = vpack.i.bf16 %v1492_v22, %v1489_v7 }
 0x44a   : > { %v2340_v10 = vpop.f32.mrf.mxu0 }
 0x44b   : > { %2511 = vrot.lane.b32.xlu0 %v2510_v3, %s2673_s2 }
 0x44c   : > { %v1497_v11 = vpop.f32.mrf.mxu0 }
 0x44e   : > { %v2343_v24 = vpop.f32.mrf.mxu0 }
 0x44f   : > { %2526 = vrot.lane.b32.xlu0 %v2525_v12, %s2674_s27 }
 0x450   : > { %v1500_v14 = vpop.f32.mrf.mxu0 }
 0x451   : > { %v2515_v21 = vpack.i.bf16 %v1500_v14, %v1497_v11 }
 0x452   : > { %v2344_v15 = vpop.f32.mrf.mxu0 }
 0x453   : > { %2516 = vrot.lane.b32.xlu1 %v2515_v21, %s2673_s2  ;;  %1696 = vrot.lane.b32.xlu0 %v3213_v29, %s2675_s20  ;;  %v2542_v15 = vld [vmem:[%s2831_s15] sm:$0xff]  }
 0x457   : > { %2521 = vrot.lane.b32.xlu1 %v2520_v16, %s2675_s20  ;;  %1700 = vrot.lane.b32.xlu0 %v3223_v40, %s2675_s20  ;;  %v2543_v16 = vld [vmem:[%s2831_s15 + $0x8] sm:$0xff]  }
 0x45b   : > { %2531 = vrot.lane.b32.xlu1 %v2530_v23, %s2673_s2  ;;  %1704 = vrot.lane.b32.xlu0 %v3233_v17, %s2675_s20  ;;  %v2544_v23 = vld [vmem:[%s2831_s15 + $0x10] sm:$0xff]  }
 0x45f   : > { %1698 = vrot.lane.b32.xlu1 %v3216_v39, %s2675_s20  ;;  %1714 = vrot.lane.b32.xlu0 %v3213_v29, %s2674_s27 }
 0x463   : > { %1702 = vrot.lane.b32.xlu1 %v3226_v27, %s2675_s20  ;;  %1718 = vrot.lane.b32.xlu0 %v3223_v40, %s2674_s27 }
 0x467   : > { %1706 = vrot.lane.b32.xlu1 %v3236_v18, %s2675_s20  ;;  %1722 = vrot.lane.b32.xlu0 %v3233_v17, %s2674_s27 }
 0x46b   : > { %1716 = vrot.lane.b32.xlu1 %v3216_v39, %s2674_s27  ;;  %1732 = vrot.lane.b32.xlu0 %v3213_v29, %s2673_s2 }
 0x46f   : > { %1720 = vrot.lane.b32.xlu1 %v3226_v27, %s2674_s27  ;;  %1736 = vrot.lane.b32.xlu0 %v3223_v40, %s2673_s2 }
 0x473   : > { %1724 = vrot.lane.b32.xlu1 %v3236_v18, %s2674_s27  ;;  %1740 = vrot.lane.b32.xlu0 %v3233_v17, %s2673_s2 }
 0x477   : > { %1734 = vrot.lane.b32.xlu1 %v3216_v39, %s2673_s2  ;;  %1780 = vrot.lane.b32.xlu0 %v3267_v26, %s2675_s20 }
 0x47b   : > { %1738 = vrot.lane.b32.xlu1 %v3226_v27, %s2673_s2  ;;  %1784 = vrot.lane.b32.xlu0 %v3277_v43, %s2675_s20 }
 0x47f   : > { %1742 = vrot.lane.b32.xlu1 %v3236_v18, %s2673_s2  ;;  %1788 = vrot.lane.b32.xlu0 %v3287_v30, %s2675_s20 }
 0x483   : > { %1782 = vrot.lane.b32.xlu1 %v3270_v41, %s2675_s20  ;;  %1798 = vrot.lane.b32.xlu0 %v3267_v26, %s2674_s27 }
 0x487   : > { %1786 = vrot.lane.b32.xlu1 %v3280_v45, %s2675_s20  ;;  %1802 = vrot.lane.b32.xlu0 %v3277_v43, %s2674_s27 }
 0x48b   : > { %1790 = vrot.lane.b32.xlu1 %v3290_v48, %s2675_s20  ;;  %1806 = vrot.lane.b32.xlu0 %v3287_v30, %s2674_s27 }
 0x48f   : > { %1800 = vrot.lane.b32.xlu1 %v3270_v41, %s2674_s27  ;;  %1816 = vrot.lane.b32.xlu0 %v3267_v26, %s2673_s2 }
 0x493   : > { %1804 = vrot.lane.b32.xlu1 %v3280_v45, %s2674_s27  ;;  %1820 = vrot.lane.b32.xlu0 %v3277_v43, %s2673_s2 }
 0x497   : > { %1808 = vrot.lane.b32.xlu1 %v3290_v48, %s2674_s27  ;;  %1824 = vrot.lane.b32.xlu0 %v3287_v30, %s2673_s2 }
 0x49b   : > { %1818 = vrot.lane.b32.xlu1 %v3270_v41, %s2673_s2 }
 0x49f   : > { %1822 = vrot.lane.b32.xlu1 %v3280_v45, %s2673_s2 }
 0x4a3   : > { %1826 = vrot.lane.b32.xlu1 %v3290_v48, %s2673_s2 }
 0x4a5   : > { %v2492_v49 = vpop.permute.xlu0 %2491 }
 0x4a6   : > { %v2494_v56 = vunpack.i.h.bf16 %v2492_v49  ;;  %v2493_v57 = vunpack.i.l.bf16 %v2492_v49 }
 0x4a8   : > { %v1579_v35 = vsel %vm545_vm1, %v3197_v44, %v2494_v56  ;;  %v1578_v4 = vsel %vm545_vm1, %v3195_v42, %v2493_v57 }
 0x4b1   : > { %v2497_v25 = vpop.permute.xlu1 %2496 }
 0x4b2   : > { %v2499_v59 = vunpack.i.h.bf16 %v2497_v25  ;;  %v2498_v34 = vunpack.i.l.bf16 %v2497_v25 }
 0x4b4   : > { %v1585_v0 = vsel %vm909_vm2, %v1579_v35, %v2499_v59 }
 0x4b5   : > { %v2502_v51 = vpop.permute.xlu1 %2501 }
 0x4b6   : > { %v2504_v28 = vunpack.i.h.bf16 %v2502_v51  ;;  %v2503_v52 = vunpack.i.l.bf16 %v2502_v51 }
 0x4b8   : > { %v1581_v60 = vsel %vm545_vm1, %v3201_v47, %v2504_v28  ;;  %v1580_v61 = vsel %vm545_vm1, %v3199_v46, %v2503_v52  ;;  %v1584_v46 = vsel %vm909_vm2, %v1578_v4, %v2498_v34 }
 0x4b9   : > { %v2507_v50 = vpop.permute.xlu0 %2506 }
 0x4ba   : > { %v2509_v53 = vunpack.i.h.bf16 %v2507_v50  ;;  %v2508_v54 = vunpack.i.l.bf16 %v2507_v50 }
 0x4bc   : > { %v1586_v38 = vsel %vm909_vm2, %v1580_v61, %v2508_v54  ;;  %v1587_v2 = vsel %vm909_vm2, %v1581_v60, %v2509_v53 }
 0x4bd   : > { %v2512_v55 = vpop.permute.xlu0 %2511 }
 0x4be   : > { %v2514_v58 = vunpack.i.h.bf16 %v2512_v55  ;;  %v2513_v37 = vunpack.i.l.bf16 %v2512_v55 }
 0x4c0   : > { %v1591_v36 = vsel %vm916_vm3, %v1585_v0, %v2514_v58  ;;  %v1590_v33 = vsel %vm916_vm3, %v1584_v46, %v2513_v37 }
 0x4c1   : > { %v2527_v7 = vpop.permute.xlu0 %2526  ;;  %v1601_v31 = vpack.c.bf16 %v1591_v36, %v1590_v33 }
 0x4c2   : > { %v2529_v22 = vunpack.i.h.bf16 %v2527_v7  ;;  %v2528_v3 = vunpack.i.l.bf16 %v2527_v7 }
 0x4c5   : > { %v2517_v62 = vpop.permute.xlu1 %2516  ;;  %v1697_v25 = vpop.permute.xlu0 %1696 }
 0x4c6   : > { %v2519_v63 = vunpack.i.h.bf16 %v2517_v62  ;;  %v2518_v1 = vunpack.i.l.bf16 %v2517_v62 }
 0x4c8   : > { %v1593_v47 = vsel %vm916_vm3, %v1587_v2, %v2519_v63  ;;  %v1592_v32 = vsel %vm916_vm3, %v1586_v38, %v2518_v1 }
 0x4c9   : > { %v1602_v5 = vpack.c.bf16 %v1593_v47, %v1592_v32  ;;  %v2522_v6 = vpop.permute.xlu1 %2521  ;;  %v1701_v50 = vpop.permute.xlu0 %1700 }
 0x4ca   : > { %v2524_v8 = vunpack.i.h.bf16 %v2522_v6  ;;  %v2523_v44 = vunpack.i.l.bf16 %v2522_v6 }
 0x4cb   : > { %2346 = vmatpush3.bf16.msra.mxu1 %v1602_v5  ;;  %v1750_v5 = vsel %vm545_vm1, %v3213_v29, %v1697_v25 }
 0x4cc   : > { %v1577_v42 = vsel %vm545_vm1, %v3193_v20, %v2524_v8  ;;  %v1576_v9 = vsel %vm545_vm1, %v3191_v19, %v2523_v44  ;;  %2347 = vmatprep.subr.bf16.mxu1 %v2671_v13 }
 0x4cd   : > { %v2532_v10 = vpop.permute.xlu1 %2531  ;;  %v1582_v24 = vsel %vm909_vm2, %v1576_v9, %v2528_v3  ;;  %v1583_v14 = vsel %vm909_vm2, %v1577_v42, %v2529_v22  ;;  %v1705_v28 = vpop.permute.xlu0 %1704 }
 0x4ce   : > { %v2534_v11 = vunpack.i.h.bf16 %v2532_v10  ;;  %v2533_v12 = vunpack.i.l.bf16 %v2532_v10 }
 0x4cf   : > { %2348 = vmatpush3.bf16.msra.mxu1 %v1601_v31 }
 0x4d0   : > { %v1588_v20 = vsel %vm916_vm3, %v1582_v24, %v2533_v12  ;;  %v1589_v21 = vsel %vm916_vm3, %v1583_v14, %v2534_v11  ;;  %2349 = vmatprep.subr.bf16.mxu1 %v2671_v13 }
 0x4d1   : > { %v1600_v19 = vpack.c.bf16 %v1589_v21, %v1588_v20  ;;  %v1699_v49 = vpop.permute.xlu1 %1698  ;;  %v1715_v53 = vpop.permute.xlu0 %1714 }
 0x4d2   : > { %v1756_v36 = vsel %vm909_vm2, %v1750_v5, %v1715_v53  ;;  %v1751_v7 = vsel %vm545_vm1, %v3216_v39, %v1699_v49 }
 0x4d3   : > { %2350 = vmatpush3.bf16.msra.mxu1 %v1600_v19 }
 0x4d5   : > { %v1703_v51 = vpop.permute.xlu1 %1702  ;;  %v1719_v55 = vpop.permute.xlu0 %1718 }
 0x4d6   : > { %2352 = vmatmul.mubr.msk.bf16.vlgmr.msra.gmra.mxu1 %vm947_vm4, %v2542_v15 }
 0x4d7   : > { %2355 = vmatprep.mubr.msk.bf16.mxu1 %vm2672_vm0, %v2671_v13 }
 0x4d9   : > { %v3356_v52 = vpop.permute.xlu1 %1706  ;;  %v3358_v57 = vpop.permute.xlu0 %1722 }
 0x4dd   : > { %v1717_v54 = vpop.permute.xlu1 %1716  ;;  %v1733_v34 = vpop.permute.xlu0 %1732 }
 0x4de   : > { %2356 = vmatmul.mubr.msk.bf16.gmra.mxu1 %vm947_vm4, %v2543_v16  ;;  %v1762_v31 = vsel %vm916_vm3, %v1756_v36, %v1733_v34  ;;  %v1757_v29 = vsel %vm909_vm2, %v1751_v7, %v1717_v54 }
 0x4df   : > { %2359 = vmatprep.mubr.msk.bf16.mxu1 %vm2672_vm0, %v2671_v13 }
 0x4e1   : > { %v1721_v56 = vpop.permute.xlu1 %1720  ;;  %v1737_v60 = vpop.permute.xlu0 %1736 }
 0x4e5   : > { %v3360_v59 = vpop.permute.xlu1 %1724  ;;  %v3362_v62 = vpop.permute.xlu0 %1740 }
 0x4e6   : > { %2360 = vmatmul.mubr.msk.bf16.gmra.mxu1 %vm947_vm4, %v2544_v23 }
 0x4e9   : > { %v1735_v13 = vpop.permute.xlu1 %1734  ;;  %v1781_v37 = vpop.permute.xlu0 %1780 }
 0x4ea   : > { %v1834_v6 = vsel %vm545_vm1, %v3267_v26, %v1781_v37  ;;  %v1752_v26 = vsel %vm545_vm1, %v3223_v40, %v1701_v50  ;;  %v1763_v14 = vsel %vm916_vm3, %v1757_v29, %v1735_v13  ;;  %v1753_v40 = vsel %vm545_vm1, %v3226_v27, %v1703_v51 }
 0x4eb   : > { %v1758_v20 = vsel %vm909_vm2, %v1752_v26, %v1719_v55  ;;  %v1759_v53 = vsel %vm909_vm2, %v1753_v40, %v1721_v56  ;;  %v1754_v27 = vsel %vm545_vm1, %v3233_v17, %v1705_v28  ;;  %v1755_v17 = vsel %vm545_vm1, %v3236_v18, %v3356_v52 }
 0x4ec   : > { %v1764_v50 = vsel %vm916_vm3, %v1758_v20, %v1737_v60  ;;  %v1760_v56 = vsel %vm909_vm2, %v1754_v27, %v3358_v57 }
 0x4ed   : > { %v1739_v61 = vpop.permute.xlu1 %1738  ;;  %v1785_v1 = vpop.permute.xlu0 %1784  ;;  %v1766_v57 = vsel %vm916_vm3, %v1760_v56, %v3362_v62 }
 0x4ee   : > { %v1836_v24 = vsel %vm545_vm1, %v3277_v43, %v1785_v1  ;;  %v1765_v60 = vsel %vm916_vm3, %v1759_v53, %v1739_v61 }
 0x4f1   : > { %v3364_v58 = vpop.permute.xlu1 %1742  ;;  %v1789_v2 = vpop.permute.xlu0 %1788 }
 0x4f5   : > { %v1783_v63 = vpop.permute.xlu1 %1782  ;;  %v1799_v4 = vpop.permute.xlu0 %1798 }
 0x4f6   : > { %v1840_v8 = vsel %vm909_vm2, %v1834_v6, %v1799_v4  ;;  %v1835_v42 = vsel %vm545_vm1, %v3270_v41, %v1783_v63  ;;  %v2569_v6 = vld [vmem:[#allocation2 + $0x28] sm:$0xff] }
 0x4f9   : > { %v1787_v38 = vpop.permute.xlu1 %1786  ;;  %v1803_v32 = vpop.permute.xlu0 %1802 }
 0x4fa   : > { %v1842_v16 = vsel %vm909_vm2, %v1836_v24, %v1803_v32  ;;  %v1837_v43 = vsel %vm545_vm1, %v3280_v45, %v1787_v38  ;;  %v1838_v45 = vsel %vm545_vm1, %v3287_v30, %v1789_v2  ;;  %v1761_v2 = vsel %vm909_vm2, %v1755_v17, %v3360_v59 }
 0x4fd   : > { %v1791_v35 = vpop.permute.xlu1 %1790  ;;  %v1807_v0 = vpop.permute.xlu0 %1806 }
 0x4fe   : > { %v1844_v4 = vsel %vm909_vm2, %v1838_v45, %v1807_v0  ;;  %v1839_v30 = vsel %vm545_vm1, %v3290_v48, %v1791_v35  ;;  %v1767_v35 = vsel %vm916_vm3, %v1761_v2, %v3364_v58 }
 0x501   : > { %v1801_v47 = vpop.permute.xlu1 %1800  ;;  %v1817_v44 = vpop.permute.xlu0 %1816 }
 0x502   : > { %v1846_v3 = vsel %vm916_vm3, %v1840_v8, %v1817_v44  ;;  %v1841_v39 = vsel %vm909_vm2, %v1835_v42, %v1801_v47 }
 0x505   : > { %v1805_v46 = vpop.permute.xlu1 %1804  ;;  %v1821_v25 = vpop.permute.xlu0 %1820 }
 0x506   : > { %v1848_v51 = vsel %vm916_vm3, %v1842_v16, %v1821_v25  ;;  %v1843_v34 = vsel %vm909_vm2, %v1837_v43, %v1805_v46 }
 0x509   : > { %v1809_v33 = vpop.permute.xlu1 %1808  ;;  %v1825_v47 = vpop.permute.xlu0 %1824 }
 0x50a   : > { %v1850_v52 = vsel %vm916_vm3, %v1844_v4, %v1825_v47  ;;  %v1845_v0 = vsel %vm909_vm2, %v1839_v30, %v1809_v33  ;;  %v2571_v33 = vld [vmem:[#allocation2 + $0x8] sm:$0xff] }
 0x50d   : > { %v1819_v12 = vpop.permute.xlu1 %1818 }
 0x50e   : > { %v1847_v19 = vsel %vm916_vm3, %v1841_v39, %v1819_v12  ;;  %v2573_v12 = vld [vmem:[#allocation2 + $0x18] sm:$0xff] }
 0x511   : > { %v1823_v13 = vpop.permute.xlu1 %1822 }
 0x512   : > { %v1849_v28 = vsel %vm916_vm3, %v1843_v34, %v1823_v13 }
 0x515   : > { %v1827_v7 = vpop.permute.xlu1 %1826 }
 0x516   : > { %v1851_v59 = vsel %vm916_vm3, %v1845_v0, %v1827_v7 }
 0x596   : > { %v1661_v9 = vpop.f32.mrf.mxu1 }
 0x597   : > { %v1852_v22 = vmul.f32 %v1762_v31, %v1661_v9  ;;  %v2570_v9 = vld [vmem:[#allocation2 + $0x10] sm:$0xff] }
 0x598   : > { %v2353_v10 = vpop.f32.mrf.mxu1 }
 0x599   : > { %v1858_v11 = vadd.f32 %v1852_v22, %v1846_v3  ;;  %v2572_v10 = vld [vmem:[#allocation2] sm:$0xff] }
 0x59a   : > { %v1664_v41 = vpop.f32.mrf.mxu1 }
 0x59b   : > { %2557 = vtanh.f32 %v1858_v11  ;;  %v1853_v21 = vmul.f32 %v1763_v14, %v1664_v41  ;;  %v2574_v41 = vld [vmem:[#allocation2 + $0x20] sm:$0xff] }
 0x59c   : > { %v2354_v15 = vpop.f32.mrf.mxu1 }
 0x59d   : > { %v1859_v23 = vadd.f32 %v1853_v21, %v1847_v19 }
 0x59e   : > { %v1669_v49 = vpop.f32.mrf.mxu1 }
 0x59f   : > { %2559 = vtanh.f32 %v1859_v23  ;;  %v1854_v54 = vmul.f32 %v1764_v50, %v1669_v49 }
 0x5a0   : > { %v2357_v55 = vpop.f32.mrf.mxu1 }
 0x5a1   : > { %v1860_v37 = vadd.f32 %v1854_v54, %v1848_v51 }
 0x5a2   : > { %v1672_v63 = vpop.f32.mrf.mxu1 }
 0x5a3   : > { %2561 = vtanh.f32 %v1860_v37  ;;  %v1855_v1 = vmul.f32 %v1765_v60, %v1672_v63 }
 0x5a4   : > { %v2358_v38 = vpop.f32.mrf.mxu1 }
 0x5a5   : > { %v1861_v32 = vadd.f32 %v1855_v1, %v1849_v28 }
 0x5a6   : > { %v1677_v61 = vpop.f32.mrf.mxu1 }
 0x5a7   : > { %2563 = vtanh.f32 %v1861_v32  ;;  %v1856_v46 = vmul.f32 %v1766_v57, %v1677_v61 }
 0x5a8   : > { %v2558_v18 = vpop.eup %2557  ;;  %v2361_v5 = vpop.f32.mrf.mxu1 }
 0x5a9   : > { %v1870_v36 = vadd.f32 %v2569_v6, %v2558_v18  ;;  %v1862_v8 = vadd.f32 %v1856_v46, %v1850_v52 }
 0x5aa   : > { %v1680_v48 = vpop.f32.mrf.mxu1 }
 0x5ab   : > { %2565 = vtanh.f32 %v1862_v8  ;;  %v1857_v62 = vmul.f32 %v1767_v35, %v1680_v48 }
 0x5ac   : > { %v2560_v44 = vpop.eup %2559  ;;  %v2362_v42 = vpop.f32.mrf.mxu1 }
 0x5ad   : > { %v1871_v31 = vadd.f32 %v2570_v9, %v2560_v44  ;;  %v1863_v29 = vadd.f32 %v1857_v62, %v1851_v59 }
 0x5af   : > { %2567 = vtanh.f32 %v1863_v29 }
 0x5b0   : > { %v2562_v22 = vpop.eup %2561 }
 0x5b1   : > { %v1872_v26 = vadd.f32 %v2571_v33, %v2562_v22 }
 0x5b4   : > { %v2564_v3 = vpop.eup %2563 }
 0x5b5   : > { %v1873_v39 = vadd.f32 %v2572_v10, %v2564_v3 }
 0x5b8   : > { %v2566_v11 = vpop.eup %2565 }
 0x5b9   : > { %v1874_v24 = vadd.f32 %v2573_v12, %v2566_v11  ;;  %1879 = sbr.rel (%p2139_p0) target bundleno = 1473 (0x5c1), region = 94 }
 0x5bc   : > { %v2568_v58 = vpop.eup %2567 }
 0x5bd   : > { %v1875_v14 = vadd.f32 %v2574_v41, %v2568_v58 }
 0x5be   : > { %1880 = vst [vmem:[#allocation2 + $0x28] sm:$0xff] %v1870_v36  ;;  %1881 = vst [vmem:[#allocation2 + $0x10] sm:$0xff] %v1871_v31 }
 0x5bf   : > { %1882 = vst [vmem:[#allocation2 + $0x8] sm:$0xff] %v1872_v26  ;;  %1883 = vst [vmem:[#allocation2] sm:$0xff] %v1873_v39 }
 0x5c0   : > { %1884 = vst [vmem:[#allocation2 + $0x18] sm:$0xff] %v1874_v24  ;;  %1885 = vst [vmem:[#allocation2 + $0x20] sm:$0xff] %v1875_v14 }
 0x5c1 PF: > { %p2140_p1 = scmp.ne.s32.totalorder %s2653_s12, 1 }
 0x5c3   : > { %1889 = sbr.rel (%p2140_p1) target bundleno = 1483 (0x5cb), region = 98 }
 0x5c8   : > { %1890 = vst [vmem:[%s2843_s26] sm:$0xff] %v1870_v36  ;;  %1891 = vst [vmem:[%s2843_s26 + $0x8] sm:$0xff] %v1871_v31 }
 0x5c9   : > { %1892 = vst [vmem:[%s2843_s26 + $0x10] sm:$0xff] %v1872_v26  ;;  %1893 = vst [vmem:[%s2843_s26 + $0x18] sm:$0xff] %v1873_v39 }
 0x5ca   : > { %1894 = vst [vmem:[%s2843_s26 + $0x20] sm:$0xff] %v1874_v24  ;;  %1895 = vst [vmem:[%s2843_s26 + $0x28] sm:$0xff] %v1875_v14 }
 0x5cb PF: > { %s2366_s14 = smul.u32 768, %s2657_s13  ;;  %s1910_s12 = sshll.u32 %s2843_s26, 4  ;;  %s3434_s12 = int_to_ptr.vmem [resolvable:$true] %s1910_s12 }
 0x5cc   : > { %s3525_s23 = sld [smem:[#allocation20_spill]]  ;;  %s3526_s28 = sand.u32 1, %s2645_s10  }
 0x5cd   : > { %s3438_s15 = scalar_lea.sflag [#allocation5], %s3526_s28  ;;  %s2575_s24 = scalar_lea.vmem %s3434_s12, 768 }
 0x5ce   : > { %p2576_p2 = scmp.ne.s32.totalorder %s3434_s12, %s2575_s24  ;;  %s2676_s13 = smov [#allocation4]  }
 0x5cf   : > { %s2579_s11 = sshll.u32 %s2676_s13, 4  ;;  %s2580_s11 = int_to_ptr.vmem [resolvable:$false] %s2579_s11 }
 0x5d0   : > { %p2577_p4 = pnand %p2576_p2, %p2778_p3  ;;  %s2581_s25 = scalar_lea.vmem %s2580_s11, 1536 }
 0x5d1   : > { %p2582_p6 = scmp.lt.s32.totalorder %s3434_s12, %s2580_s11  ;;  %p2583_p7 = scmp.lt.s32.totalorder %s2581_s25, %s2575_s24 }
 0x5d2   : > { %s3432_s18 = scalar_lea.hbm %s3525_s23, %s2366_s14  ;;  %p2578_p5 = pneg %p2577_p4 }
 0x5d3   : > { %p2584_p8 = por %p2583_p7, %p2582_p6 }
 0x5d5   : > { %p2585_p10 = pnand %p2584_p8, %p2578_p5 }
 0x5d7   : > { %2588 = shalt.err (!%p2585_p10)
}
 0x5d8   : > { %s2589_s29 = scalar_lea.hbm %s3432_s18, 768  ;;  %s2593_s9 = scalar_lea.hbm %s3525_s23, 1536 }
 0x5d9   : > { %p2590_p11 = scmp.ne.s32.totalorder %s3432_s18, %s2589_s29  ;;  %p2594_p0 = scmp.lt.s32.totalorder %s3432_s18, %s3525_s23 }
 0x5da   : > { %p2595_p1 = scmp.lt.s32.totalorder %s2593_s9, %s2589_s29 }
 0x5db   : > { %p2591_p12 = pnand %p2590_p11, %p2778_p3 }
 0x5dc   : > { %p2596_p2 = por %p2595_p1, %p2594_p0 }
 0x5dd   : > { %p2592_p13 = pneg %p2591_p12 }
 0x5df   : > { %p2597_p4 = pnand %p2596_p2, %p2592_p13 }
 0x5e1   : > { %2600 = shalt.err (!%p2597_p4)
}
 0x5e2   : > { %s2677_s19 = smov 128   ;;  %s2678_s2 = smov 8  }
 0x5e3   : > { %2367 = dma.vmem_to_hbm [thread:$0]  (%p2778_p3), %s3434_s12, 768, %s3432_s18, %s3438_s15, %s2677_s19, %s2677_s19, %s2678_s2  }
 0x5e4 PF: > { %s3527_s27 = sld [smem:[#allocation13_spill]] }
 0x5e5   : > { %s3528_s20 = sld [smem:[#allocation9_spill]] }
 0x5ea   : > { %p2373_p5 = scmp.ge.s32.totalorder %s3527_s27, 2 }
 0x5eb   : > { %s1925_s16 = sand.u32 1, %s3528_s20  }
 0x5ec   : > { %p2370_p6 = pnand %p2373_p5, %p2788_p9  ;;  %s1926_s22 = scalar_lea.sflag [#allocation5], %s1925_s16 }
 0x5ee   : > { %p2371_p7 = pneg %p2370_p6 }
 0x5f0   : > { %2636 = dma.done.wait (%p2371_p7), %s1926_s22, 768  }
 0x5f1   : > { %2638 = vsyncadd (%p2371_p7), %s1926_s22, 4294966528  ;;  %s22_s16 = sadd.s32 1, %s3527_s27   ;;  %s3530_s28 = sld [smem:[#allocation10_spill]] }
 0x5f2   : > { %p19_p8 = scmp.ge.s32.totalorder %s22_s16, 6   ;;  %s3531_s11 = sld [smem:[#allocation17_spill]] }
 0x5f3   : > { %s3532_s12 = sld [smem:[#allocation11_spill]]  ;;  %s3536_s30 = smov %s2645_s10 }
 0x5f4   : > { %s3533_s13 = sld [smem:[#allocation12_spill]]  ;;  %21 = sbr.rel (!%p19_p8) target bundleno = 9 (0x9), region = 163 }
 0x5f5   : > { %s3534_s14 = sld [smem:[#allocation14_spill]] }
 0x5f6   : > { %s3535_s15 = sld [smem:[#allocation15_spill]] }
 0x5f7   : > { %s3537_s10 = smov %s3530_s28 }
 0x5f9   :  { %1931 = vsyncpa [#allocation5], 1 }
 0x5fa   :  { %1933 = vsyncpa [#allocation5 + $0x1], 1 }
 0x5fb   :  { %1934 = vsyncmov [#allocation3] }
 0x5fe   :  { %s1935_s21 = vpop.sfrf %1934 }
 0x5ff   :  { %p2144_p3 = scmp.ne.s32.totalorder %s1935_s21, 0 }
 0x601   :  { %1939 = shalt.err (%p2144_p3)  }

</bundles_post_ra>
